<compile_context>
chip_gen: v7x
topology: tpu7x:2x2x1
jax: 0.10.0
libtpu: 0.0.40
codegen_flags: <defaults>
</compile_context>

<pallas_src>
import numpy as np
import jax
import jax.numpy as jnp
from jax.experimental import pallas as pl
from jax.experimental.pallas import tpu as pltpu

NEG_SLOPE = 0.01  # nn.LeakyReLU default


def _leaky_relu(x):
    return jnp.where(x > 0, x, NEG_SLOPE * x)


def decoder_kernel(z_ref, w1_ref, b1_ref, wr_ref, br_ref, w2_ref, b2_ref, o_ref):
    # Whole MLP hot path on-chip: 3 MXU matmuls (bf16 operands, f32 acc) + f32 VPU/EUP.
    cd = w1_ref.dtype                      # compute (MXU operand) dtype, e.g. bf16
    z = z_ref[...].astype(cd)

    # Layer 1: Linear(latent_dim, hidden_dim) + LeakyReLU
    h = jnp.dot(z, w1_ref[...], preferred_element_type=jnp.float32) + b1_ref[...]
    h = _leaky_relu(h)

    # Layer 2: ResidLinear: LeakyReLU(Linear(h) + h)  (residual add in f32)
    hr = (jnp.dot(h.astype(cd), wr_ref[...], preferred_element_type=jnp.float32)
          + br_ref[...] + h)
    hr = _leaky_relu(hr)

    # Output layer: Linear(hidden_dim, output_dim) + Sigmoid.
    y = jnp.dot(hr.astype(cd), w2_ref[...], preferred_element_type=jnp.float32) + b2_ref[...]
    # sigmoid(y) = 0.5*tanh(0.5*y) + 0.5 : a single EUP push; mul/add ride the VALU slack.
    o_ref[...] = (0.5 * jnp.tanh(0.5 * y) + 0.5).astype(o_ref.dtype)


def _round_down8(x):
    return max(8, (x // 8) * 8)


def _select_tb_and_vmem(B, latent_dim, hidden_dim, out_dim_p, out_itemsize,
                        params_bytes, tb_user):
    """Pick the batch tile from a VMEM byte budget; return (TB, vmem_limit_bytes)."""
    try:
        phys_vmem = int(pltpu.get_tpu_info().vmem_capacity_bytes)
    except Exception:
        phys_vmem = 64 << 20                       # conservative (v7x per-TC physical)
    budget = min(48 << 20, (phys_vmem * 3) // 4)   # headroom for compiler scratch

    def est_bytes(tb):
        zin = 2 * tb * latent_dim * 4               # double-buffered z tile (f32)
        out = 2 * tb * out_dim_p * out_itemsize     # double-buffered output tile
        act = tb * (2 * hidden_dim + out_dim_p) * 4  # f32 intermediates (h, hr, y)
        return params_bytes + zin + out + act

    if tb_user is not None:
        tb = min(int(tb_user), B)
        if tb < B:
            tb = _round_down8(tb)                   # (8,128) sublane rule
    else:
        tb = min(1024, B)                           # big tiles amortize per-step overhead
        if B >= 64:
            # Keep >= 4 grid steps so v7x's second TensorCore gets work.
            tb = min(tb, pl.cdiv(B, 4))
        if tb < B:
            tb = _round_down8(tb)
        while tb > 8 and est_bytes(tb) > budget:
            tb = _round_down8(tb // 2)

    vmem_limit = min(int(phys_vmem * 0.9), max(32 << 20, 2 * est_bytes(tb)))
    return tb, vmem_limit


def decoder_forward(z, params, data_dim, *, tb=None, out_dtype=jnp.bfloat16):
    """z: (B, latent_dim) float32. Returns (B, *data_dim) in out_dtype.

    Fast path: out_dtype=jnp.bfloat16 (default) halves the dominant HBM writeback of
    this mem-bound kernel. Pass jnp.float32 for full-precision output.
    """
    w1, b1, wr, br, w2, b2 = params
    B, latent_dim = z.shape
    hidden_dim = w1.shape[1]
    out_dim = w2.shape[1]

    # Lane-pad the output width to a multiple of 128 -> unmasked stores (biggest
    # single lever for store-bound kernels). Padded columns produce sigmoid(0)=0.5
    # and are sliced off below.
    out_dim_p = ((out_dim + 127) // 128) * 128
    if out_dim_p != out_dim:
        pad = out_dim_p - out_dim
        w2 = jnp.pad(w2, ((0, 0), (0, pad)))
        b2 = jnp.pad(b2, ((0, 0), (0, pad)))
    params_p = (w1, b1, wr, br, w2, b2)

    out_itemsize = jnp.dtype(out_dtype).itemsize
    # Conservative (double-buffered) weight footprint for the VMEM budget.
    params_bytes = 2 * sum(int(p.size) * p.dtype.itemsize for p in params_p)
    TB, vmem_limit = _select_tb_and_vmem(B, latent_dim, hidden_dim, out_dim_p,
                                         out_itemsize, params_bytes, tb)

    flops = 2 * B * (latent_dim * hidden_dim + hidden_dim * hidden_dim
                     + hidden_dim * out_dim_p)
    bytes_accessed = (int(z.size) * z.dtype.itemsize
                      + sum(int(p.size) * p.dtype.itemsize for p in params_p)
                      + B * out_dim_p * out_itemsize)
    cost = pl.CostEstimate(flops=flops, transcendentals=B * out_dim_p,
                           bytes_accessed=bytes_accessed)

    def _call(single_buffer_weights):
        if single_buffer_weights:
            # Constant block index every step -> weights stay VMEM-resident; single
            # buffer reclaims the second (useless) pipeline buffer.
            resident = lambda a: pl.BlockSpec(a.shape, lambda i: (0, 0),
                                              pipeline_mode=pl.Buffered(1))
        else:
            resident = lambda a: pl.BlockSpec(a.shape, lambda i: (0, 0))
        return pl.pallas_call(
            decoder_kernel,
            out_shape=jax.ShapeDtypeStruct((B, out_dim_p), out_dtype),
            grid=(pl.cdiv(B, TB),),
            in_specs=[
                pl.BlockSpec((TB, latent_dim), lambda i: (i, 0)),   # z: batch-tiled
                resident(w1), resident(b1),
                resident(wr), resident(br),
                resident(w2), resident(b2),
            ],
            out_specs=pl.BlockSpec((TB, out_dim_p), lambda i: (i, 0)),
            compiler_params=pltpu.CompilerParams(
                dimension_semantics=("parallel",),
                vmem_limit_bytes=vmem_limit),
            cost_estimate=cost,
        )(z, w1, b1, wr, br, w2, b2)

    try:
        y = jax.block_until_ready(_call(True))
    except Exception:
        # Fallback if this jax build rejects single-buffered resident blocks.
        y = _call(False)

    if out_dim_p != out_dim:
        y = y[:, :out_dim]
    return y.reshape((B,) + tuple(data_dim))


def init_params(key, latent_dim, hidden_dim, output_dim, param_dtype=jnp.bfloat16):
    """Deterministic init mimicking nn.Linear's uniform(-1/sqrt(fan_in), 1/sqrt(fan_in)).
    Weights stored as (in_features, out_features) in `param_dtype`; biases kept f32."""
    def linear(k, n_in, n_out):
        kw, kb = jax.random.split(k)
        bound = 1.0 / np.sqrt(n_in)
        w = jax.random.uniform(kw, (n_in, n_out), jnp.float32, -bound, bound).astype(param_dtype)
        b = jax.random.uniform(kb, (1, n_out), jnp.float32, -bound, bound)
        return w, b

    k1, k2, k3 = jax.random.split(key, 3)
    w1, b1 = linear(k1, latent_dim, hidden_dim)
    wr, br = linear(k2, hidden_dim, hidden_dim)
    w2, b2 = linear(k3, hidden_dim, output_dim)
    return (w1, b1, wr, br, w2, b2)


def reference_forward(z, params, data_dim):
    """Pure-JAX reference with the same dtype policy (bf16 matmul operands, f32 acc)."""
    w1, b1, wr, br, w2, b2 = params
    cd = w1.dtype
    h = _leaky_relu(jnp.dot(z.astype(cd), w1, preferred_element_type=jnp.float32) + b1)
    hr = _leaky_relu(jnp.dot(h.astype(cd), wr, preferred_element_type=jnp.float32) + br + h)
    y = jax.nn.sigmoid(jnp.dot(hr.astype(cd), w2, preferred_element_type=jnp.float32) + b2)
    return y.reshape((z.shape[0],) + tuple(data_dim))


if __name__ == "__main__":
    # Non-lane-aligned output (784) exercises the 128-lane padding path (784 -> 896).
    data_dim = (1, 28, 28)          # -> output_dim = 784
    latent_dim = 8
    hidden_dim = 128
    batch = 64                      # auto tile -> TB=16, grid of 4 steps

    key = jax.random.PRNGKey(0)
    kz, kp = jax.random.split(key)
    z = jax.random.normal(kz, (batch, latent_dim), jnp.float32)
    params = init_params(kp, latent_dim, hidden_dim, int(np.prod(data_dim)),
                         param_dtype=jnp.bfloat16)

    ref = reference_forward(z, params, data_dim)

    # Strict correctness check with f32 writeback.
    out_f32 = decoder_forward(z, params, data_dim, out_dtype=jnp.float32)
    out_f32 = jax.block_until_ready(out_f32)
    np.testing.assert_allclose(np.asarray(out_f32, dtype=np.float32),
                               np.asarray(ref, dtype=np.float32),
                               rtol=5e-3, atol=5e-3)

    # Default fast path: bf16 writeback (halves dominant HBM traffic).
    out_bf16 = decoder_forward(z, params, data_dim)
    out_bf16 = jax.block_until_ready(out_bf16)
    np.testing.assert_allclose(np.asarray(out_bf16, dtype=np.float32),
                               np.asarray(ref, dtype=np.float32),
                               rtol=2e-2, atol=2e-2)

    assert out_f32.shape == (batch,) + data_dim
    assert out_bf16.shape == (batch,) + data_dim

    print("KERNEL_OK")
</pallas_src>

<mosaic_0001>
module attributes {stable_mosaic.version = 11 : i64} {
  func.func @decoder_kernel(%arg0: i32, %arg1: memref<16x8xf32, #tpu.memory_space<vmem>>, %arg2: memref<8x128xbf16, #tpu.memory_space<vmem>>, %arg3: memref<1x128xf32, #tpu.memory_space<vmem>>, %arg4: memref<128x128xbf16, #tpu.memory_space<vmem>>, %arg5: memref<1x128xf32, #tpu.memory_space<vmem>>, %arg6: memref<128x896xbf16, #tpu.memory_space<vmem>>, %arg7: memref<1x896xf32, #tpu.memory_space<vmem>>, %arg8: memref<16x896xf32, #tpu.memory_space<vmem>>) attributes {dimension_semantics = [#tpu.dimension_semantics<parallel>], iteration_bounds = array<i64: 4>, scalar_prefetch = 0 : i64, scratch_operands = 0 : i64, tpu.core_type = #tpu.core_type<tc>, window_params = [{transform_indices = @transform_0, window_bounds = array<i64: 16, 8>}, {pipeline_mode = #tpu.pipeline_mode<synchronous>, transform_indices = @transform_1, window_bounds = array<i64: 8, 128>}, {pipeline_mode = #tpu.pipeline_mode<synchronous>, transform_indices = @transform_2, window_bounds = array<i64: 1, 128>}, {pipeline_mode = #tpu.pipeline_mode<synchronous>, transform_indices = @transform_3, window_bounds = array<i64: 128, 128>}, {pipeline_mode = #tpu.pipeline_mode<synchronous>, transform_indices = @transform_4, window_bounds = array<i64: 1, 128>}, {pipeline_mode = #tpu.pipeline_mode<synchronous>, transform_indices = @transform_5, window_bounds = array<i64: 128, 896>}, {pipeline_mode = #tpu.pipeline_mode<synchronous>, transform_indices = @transform_6, window_bounds = array<i64: 1, 896>}, {transform_indices = @transform_7, window_bounds = array<i64: 16, 896>}]} {
    %c0 = arith.constant 0 : index
    %c0_0 = arith.constant 0 : index
    %0 = vector.load %arg1[%c0, %c0_0] : memref<16x8xf32, #tpu.memory_space<vmem>>, vector<16x8xf32>
    %1 = arith.truncf %0 : vector<16x8xf32> to vector<16x8xbf16>
    %c0_1 = arith.constant 0 : index
    %c0_2 = arith.constant 0 : index
    %2 = vector.load %arg2[%c0_1, %c0_2] : memref<8x128xbf16, #tpu.memory_space<vmem>>, vector<8x128xbf16>
    %cst = arith.constant dense<0.000000e+00> : vector<16x128xf32>
    %3 = tpu.matmul %1, %2, %cst {dimension_numbers = #tpu.dot_dimension_numbers<[1], [0], [0], [1], [0, 0, 1, 1], [], []>} : vector<16x8xbf16>, vector<8x128xbf16>, vector<16x128xf32> -> vector<16x128xf32>
    %c0_3 = arith.constant 0 : index
    %c0_4 = arith.constant 0 : index
    %4 = vector.load %arg3[%c0_3, %c0_4] : memref<1x128xf32, #tpu.memory_space<vmem>>, vector<1x128xf32>
    %5 = vector.broadcast %4 : vector<1x128xf32> to vector<16x128xf32>
    %6 = arith.addf %3, %5 : vector<16x128xf32>
    %cst_5 = arith.constant 0.000000e+00 : f32
    %7 = vector.broadcast %cst_5 : f32 to vector<16x128xf32>
    %8 = arith.cmpf ogt, %6, %7 : vector<16x128xf32>
    %cst_6 = arith.constant 0.00999999977 : f32
    %9 = vector.broadcast %cst_6 : f32 to vector<16x128xf32>
    %10 = arith.mulf %9, %6 : vector<16x128xf32>
    %11 = arith.select %8, %6, %10 : vector<16x128xi1>, vector<16x128xf32>
    %12 = arith.truncf %11 : vector<16x128xf32> to vector<16x128xbf16>
    %c0_7 = arith.constant 0 : index
    %c0_8 = arith.constant 0 : index
    %13 = vector.load %arg4[%c0_7, %c0_8] : memref<128x128xbf16, #tpu.memory_space<vmem>>, vector<128x128xbf16>
    %cst_9 = arith.constant dense<0.000000e+00> : vector<16x128xf32>
    %14 = tpu.matmul %12, %13, %cst_9 {dimension_numbers = #tpu.dot_dimension_numbers<[1], [0], [0], [1], [0, 0, 1, 1], [], []>} : vector<16x128xbf16>, vector<128x128xbf16>, vector<16x128xf32> -> vector<16x128xf32>
    %c0_10 = arith.constant 0 : index
    %c0_11 = arith.constant 0 : index
    %15 = vector.load %arg5[%c0_10, %c0_11] : memref<1x128xf32, #tpu.memory_space<vmem>>, vector<1x128xf32>
    %16 = vector.broadcast %15 : vector<1x128xf32> to vector<16x128xf32>
    %17 = arith.addf %14, %16 : vector<16x128xf32>
    %18 = arith.addf %17, %11 : vector<16x128xf32>
    %cst_12 = arith.constant 0.000000e+00 : f32
    %19 = vector.broadcast %cst_12 : f32 to vector<16x128xf32>
    %20 = arith.cmpf ogt, %18, %19 : vector<16x128xf32>
    %cst_13 = arith.constant 0.00999999977 : f32
    %21 = vector.broadcast %cst_13 : f32 to vector<16x128xf32>
    %22 = arith.mulf %21, %18 : vector<16x128xf32>
    %23 = arith.select %20, %18, %22 : vector<16x128xi1>, vector<16x128xf32>
    %24 = arith.truncf %23 : vector<16x128xf32> to vector<16x128xbf16>
    %c0_14 = arith.constant 0 : index
    %c0_15 = arith.constant 0 : index
    %25 = vector.load %arg6[%c0_14, %c0_15] : memref<128x896xbf16, #tpu.memory_space<vmem>>, vector<128x896xbf16>
    %cst_16 = arith.constant dense<0.000000e+00> : vector<16x896xf32>
    %26 = tpu.matmul %24, %25, %cst_16 {dimension_numbers = #tpu.dot_dimension_numbers<[1], [0], [0], [1], [0, 0, 1, 1], [], []>} : vector<16x128xbf16>, vector<128x896xbf16>, vector<16x896xf32> -> vector<16x896xf32>
    %c0_17 = arith.constant 0 : index
    %c0_18 = arith.constant 0 : index
    %27 = vector.load %arg7[%c0_17, %c0_18] : memref<1x896xf32, #tpu.memory_space<vmem>>, vector<1x896xf32>
    %28 = vector.broadcast %27 : vector<1x896xf32> to vector<16x896xf32>
    %29 = arith.addf %26, %28 : vector<16x896xf32>
    %cst_19 = arith.constant 5.000000e-01 : f32
    %30 = vector.broadcast %cst_19 : f32 to vector<16x896xf32>
    %31 = arith.mulf %30, %29 : vector<16x896xf32>
    %32 = math.tanh %31 : vector<16x896xf32>
    %cst_20 = arith.constant 5.000000e-01 : f32
    %33 = vector.broadcast %cst_20 : f32 to vector<16x896xf32>
    %34 = arith.mulf %33, %32 : vector<16x896xf32>
    %cst_21 = arith.constant 5.000000e-01 : f32
    %35 = vector.broadcast %cst_21 : f32 to vector<16x896xf32>
    %36 = arith.addf %34, %35 : vector<16x896xf32>
    %c0_22 = arith.constant 0 : index
    %c0_23 = arith.constant 0 : index
    %37 = vector.load %arg8[%c0_22, %c0_23] : memref<16x896xf32, #tpu.memory_space<vmem>>, vector<16x896xf32>
    tpu.vector_store %arg8[%c0_22, %c0_23], %36 {strides = array<i32>} : memref<16x896xf32, #tpu.memory_space<vmem>>, vector<16x896xf32>,
    return
  }
  func.func @transform_0(%arg0: i32) -> (i32, i32) {
    %c0_i32 = arith.constant 0 : i32
    %c0_i32_0 = arith.constant 0 : i32
    return %arg0, %c0_i32 : i32, i32
  }
  func.func @transform_1(%arg0: i32) -> (i32, i32) {
    %c0_i32 = arith.constant 0 : i32
    %c0_i32_0 = arith.constant 0 : i32
    %c0_i32_1 = arith.constant 0 : i32
    return %c0_i32, %c0_i32_0 : i32, i32
  }
  func.func @transform_2(%arg0: i32) -> (i32, i32) {
    %c0_i32 = arith.constant 0 : i32
    %c0_i32_0 = arith.constant 0 : i32
    %c0_i32_1 = arith.constant 0 : i32
    return %c0_i32, %c0_i32_0 : i32, i32
  }
  func.func @transform_3(%arg0: i32) -> (i32, i32) {
    %c0_i32 = arith.constant 0 : i32
    %c0_i32_0 = arith.constant 0 : i32
    %c0_i32_1 = arith.constant 0 : i32
    return %c0_i32, %c0_i32_0 : i32, i32
  }
  func.func @transform_4(%arg0: i32) -> (i32, i32) {
    %c0_i32 = arith.constant 0 : i32
    %c0_i32_0 = arith.constant 0 : i32
    %c0_i32_1 = arith.constant 0 : i32
    return %c0_i32, %c0_i32_0 : i32, i32
  }
  func.func @transform_5(%arg0: i32) -> (i32, i32) {
    %c0_i32 = arith.constant 0 : i32
    %c0_i32_0 = arith.constant 0 : i32
    %c0_i32_1 = arith.constant 0 : i32
    return %c0_i32, %c0_i32_0 : i32, i32
  }
  func.func @transform_6(%arg0: i32) -> (i32, i32) {
    %c0_i32 = arith.constant 0 : i32
    %c0_i32_0 = arith.constant 0 : i32
    %c0_i32_1 = arith.constant 0 : i32
    return %c0_i32, %c0_i32_0 : i32, i32
  }
  func.func @transform_7(%arg0: i32) -> (i32, i32) {
    %c0_i32 = arith.constant 0 : i32
    %c0_i32_0 = arith.constant 0 : i32
    return %arg0, %c0_i32 : i32, i32
  }
}

module attributes {stable_mosaic.version = 11 : i64} {
  func.func @decoder_kernel(%arg0: i32, %arg1: memref<16x8xf32, #tpu.memory_space<vmem>>, %arg2: memref<8x128xbf16, #tpu.memory_space<vmem>>, %arg3: memref<1x128xf32, #tpu.memory_space<vmem>>, %arg4: memref<128x128xbf16, #tpu.memory_space<vmem>>, %arg5: memref<1x128xf32, #tpu.memory_space<vmem>>, %arg6: memref<128x896xbf16, #tpu.memory_space<vmem>>, %arg7: memref<1x896xf32, #tpu.memory_space<vmem>>, %arg8: memref<16x896xf32, #tpu.memory_space<vmem>>) attributes {dimension_semantics = [#tpu.dimension_semantics<parallel>], iteration_bounds = array<i64: 4>, scalar_prefetch = 0 : i64, scratch_operands = 0 : i64, tpu.core_type = #tpu.core_type<tc>, window_params = [{transform_indices = @transform_0, window_bounds = array<i64: 16, 8>}, {pipeline_mode = #tpu.pipeline_mode<synchronous>, transform_indices = @transform_1, window_bounds = array<i64: 8, 128>}, {pipeline_mode = #tpu.pipeline_mode<synchronous>, transform_indices = @transform_2, window_bounds = array<i64: 1, 128>}, {pipeline_mode = #tpu.pipeline_mode<synchronous>, transform_indices = @transform_3, window_bounds = array<i64: 128, 128>}, {pipeline_mode = #tpu.pipeline_mode<synchronous>, transform_indices = @transform_4, window_bounds = array<i64: 1, 128>}, {pipeline_mode = #tpu.pipeline_mode<synchronous>, transform_indices = @transform_5, window_bounds = array<i64: 128, 896>}, {pipeline_mode = #tpu.pipeline_mode<synchronous>, transform_indices = @transform_6, window_bounds = array<i64: 1, 896>}, {transform_indices = @transform_7, window_bounds = array<i64: 16, 896>}]} {
    %c0 = arith.constant 0 : index
    %c0_0 = arith.constant 0 : index
    %0 = vector.load %arg1[%c0, %c0_0] : memref<16x8xf32, #tpu.memory_space<vmem>>, vector<16x8xf32>
    %1 = arith.truncf %0 : vector<16x8xf32> to vector<16x8xbf16>
    %c0_1 = arith.constant 0 : index
    %c0_2 = arith.constant 0 : index
    %2 = vector.load %arg2[%c0_1, %c0_2] : memref<8x128xbf16, #tpu.memory_space<vmem>>, vector<8x128xbf16>
    %cst = arith.constant dense<0.000000e+00> : vector<16x128xf32>
    %3 = tpu.matmul %1, %2, %cst {dimension_numbers = #tpu.dot_dimension_numbers<[1], [0], [0], [1], [0, 0, 1, 1], [], []>} : vector<16x8xbf16>, vector<8x128xbf16>, vector<16x128xf32> -> vector<16x128xf32>
    %c0_3 = arith.constant 0 : index
    %c0_4 = arith.constant 0 : index
    %4 = vector.load %arg3[%c0_3, %c0_4] : memref<1x128xf32, #tpu.memory_space<vmem>>, vector<1x128xf32>
    %5 = vector.broadcast %4 : vector<1x128xf32> to vector<16x128xf32>
    %6 = arith.addf %3, %5 : vector<16x128xf32>
    %cst_5 = arith.constant 0.000000e+00 : f32
    %7 = vector.broadcast %cst_5 : f32 to vector<16x128xf32>
    %8 = arith.cmpf ogt, %6, %7 : vector<16x128xf32>
    %cst_6 = arith.constant 0.00999999977 : f32
    %9 = vector.broadcast %cst_6 : f32 to vector<16x128xf32>
    %10 = arith.mulf %9, %6 : vector<16x128xf32>
    %11 = arith.select %8, %6, %10 : vector<16x128xi1>, vector<16x128xf32>
    %12 = arith.truncf %11 : vector<16x128xf32> to vector<16x128xbf16>
    %c0_7 = arith.constant 0 : index
    %c0_8 = arith.constant 0 : index
    %13 = vector.load %arg4[%c0_7, %c0_8] : memref<128x128xbf16, #tpu.memory_space<vmem>>, vector<128x128xbf16>
    %cst_9 = arith.constant dense<0.000000e+00> : vector<16x128xf32>
    %14 = tpu.matmul %12, %13, %cst_9 {dimension_numbers = #tpu.dot_dimension_numbers<[1], [0], [0], [1], [0, 0, 1, 1], [], []>} : vector<16x128xbf16>, vector<128x128xbf16>, vector<16x128xf32> -> vector<16x128xf32>
    %c0_10 = arith.constant 0 : index
    %c0_11 = arith.constant 0 : index
    %15 = vector.load %arg5[%c0_10, %c0_11] : memref<1x128xf32, #tpu.memory_space<vmem>>, vector<1x128xf32>
    %16 = vector.broadcast %15 : vector<1x128xf32> to vector<16x128xf32>
    %17 = arith.addf %14, %16 : vector<16x128xf32>
    %18 = arith.addf %17, %11 : vector<16x128xf32>
    %cst_12 = arith.constant 0.000000e+00 : f32
    %19 = vector.broadcast %cst_12 : f32 to vector<16x128xf32>
    %20 = arith.cmpf ogt, %18, %19 : vector<16x128xf32>
    %cst_13 = arith.constant 0.00999999977 : f32
    %21 = vector.broadcast %cst_13 : f32 to vector<16x128xf32>
    %22 = arith.mulf %21, %18 : vector<16x128xf32>
    %23 = arith.select %20, %18, %22 : vector<16x128xi1>, vector<16x128xf32>
    %24 = arith.truncf %23 : vector<16x128xf32> to vector<16x128xbf16>
    %c0_14 = arith.constant 0 : index
    %c0_15 = arith.constant 0 : index
    %25 = vector.load %arg6[%c0_14, %c0_15] : memref<128x896xbf16, #tpu.memory_space<vmem>>, vector<128x896xbf16>
    %cst_16 = arith.constant dense<0.000000e+00> : vector<16x896xf32>
    %26 = tpu.matmul %24, %25, %cst_16 {dimension_numbers = #tpu.dot_dimension_numbers<[1], [0], [0], [1], [0, 0, 1, 1], [], []>} : vector<16x128xbf16>, vector<128x896xbf16>, vector<16x896xf32> -> vector<16x896xf32>
    %c0_17 = arith.constant 0 : index
    %c0_18 = arith.constant 0 : index
    %27 = vector.load %arg7[%c0_17, %c0_18] : memref<1x896xf32, #tpu.memory_space<vmem>>, vector<1x896xf32>
    %28 = vector.broadcast %27 : vector<1x896xf32> to vector<16x896xf32>
    %29 = arith.addf %26, %28 : vector<16x896xf32>
    %cst_19 = arith.constant 5.000000e-01 : f32
    %30 = vector.broadcast %cst_19 : f32 to vector<16x896xf32>
    %31 = arith.mulf %30, %29 : vector<16x896xf32>
    %32 = math.tanh %31 : vector<16x896xf32>
    %cst_20 = arith.constant 5.000000e-01 : f32
    %33 = vector.broadcast %cst_20 : f32 to vector<16x896xf32>
    %34 = arith.mulf %33, %32 : vector<16x896xf32>
    %cst_21 = arith.constant 5.000000e-01 : f32
    %35 = vector.broadcast %cst_21 : f32 to vector<16x896xf32>
    %36 = arith.addf %34, %35 : vector<16x896xf32>
    %c0_22 = arith.constant 0 : index
    %c0_23 = arith.constant 0 : index
    %37 = vector.load %arg8[%c0_22, %c0_23] : memref<16x896xf32, #tpu.memory_space<vmem>>, vector<16x896xf32>
    tpu.vector_store %arg8[%c0_22, %c0_23], %36 {strides = array<i32>} : memref<16x896xf32, #tpu.memory_space<vmem>>, vector<16x896xf32>,
    return
  }
  func.func @transform_0(%arg0: i32) -> (i32, i32) {
    %c0_i32 = arith.constant 0 : i32
    %c0_i32_0 = arith.constant 0 : i32
    return %arg0, %c0_i32 : i32, i32
  }
  func.func @transform_1(%arg0: i32) -> (i32, i32) {
    %c0_i32 = arith.constant 0 : i32
    %c0_i32_0 = arith.constant 0 : i32
    %c0_i32_1 = arith.constant 0 : i32
    return %c0_i32, %c0_i32_0 : i32, i32
  }
  func.func @transform_2(%arg0: i32) -> (i32, i32) {
    %c0_i32 = arith.constant 0 : i32
    %c0_i32_0 = arith.constant 0 : i32
    %c0_i32_1 = arith.constant 0 : i32
    return %c0_i32, %c0_i32_0 : i32, i32
  }
  func.func @transform_3(%arg0: i32) -> (i32, i32) {
    %c0_i32 = arith.constant 0 : i32
    %c0_i32_0 = arith.constant 0 : i32
    %c0_i32_1 = arith.constant 0 : i32
    return %c0_i32, %c0_i32_0 : i32, i32
  }
  func.func @transform_4(%arg0: i32) -> (i32, i32) {
    %c0_i32 = arith.constant 0 : i32
    %c0_i32_0 = arith.constant 0 : i32
    %c0_i32_1 = arith.constant 0 : i32
    return %c0_i32, %c0_i32_0 : i32, i32
  }
  func.func @transform_5(%arg0: i32) -> (i32, i32) {
    %c0_i32 = arith.constant 0 : i32
    %c0_i32_0 = arith.constant 0 : i32
    %c0_i32_1 = arith.constant 0 : i32
    return %c0_i32, %c0_i32_0 : i32, i32
  }
  func.func @transform_6(%arg0: i32) -> (i32, i32) {
    %c0_i32 = arith.constant 0 : i32
    %c0_i32_0 = arith.constant 0 : i32
    %c0_i32_1 = arith.constant 0 : i32
    return %c0_i32, %c0_i32_0 : i32, i32
  }
  func.func @transform_7(%arg0: i32) -> (i32, i32) {
    %c0_i32 = arith.constant 0 : i32
    %c0_i32_0 = arith.constant 0 : i32
    return %arg0, %c0_i32 : i32, i32
  }
}

</mosaic_0001>

<bundles_post_ra>
// kernel: tpu_custom_call.1
= control target key start
LH: loop header
LB: loop body
LE: loop exit
PB: predicated region body
PF: predicated region fallthrough
CT: control target
= control target key end

     0   :  { %12 = vsyncpa [#allocation3], 0  ;;  %s1903_s0 = inlined_call_operand.vmem [shape: f32[64,8], index: 0, kind: input, shape index: {}]   ;;  %s1904_s1 = inlined_call_operand.vmem [shape: bf16[8,128], index: 1, kind: input, shape index: {}]   ;;  %s1905_s2 = inlined_call_operand.vmem [shape: f32[1,128], index: 2, kind: input, shape index: {}]   ;;  %s1906_s3 = inlined_call_operand.vmem [shape: bf16[128,128], index: 3, kind: input, shape index: {}]   ;;  %s1907_s4 = inlined_call_operand.vmem [shape: f32[1,128], index: 4, kind: input, shape index: {}]   ;;  %s1908_s5 = inlined_call_operand.hbm [shape: bf16[128,896], index: 5, kind: input, shape index: {}]   ;;  %s1909_s6 = inlined_call_operand.vmem [shape: f32[1,896], index: 6, kind: input, shape index: {}]   ;;  %s1910_s7 = inlined_call_operand.hbm [shape: f32[64,896], index: 7, kind: output, shape index: {}]  }
   0x1   :  { %13 = vsyncpa [#allocation4], 0 }
   0x2   :  { %15 = vsyncpa [#allocation4 + $0x1], 0  ;;  %s1668_s24 = smov 0   ;;  %s1670_s25 = smov 0  }
   0x3   :  { %s1672_s26 = smov 0   ;;  %s1674_s27 = smov 0  }
   0x4 LB: > { %s1689_s28 = sadd.s32 4294967295, %s1617_s27   ;;  %s1202_s29 = sadd.s32 4294967294, %s1617_s27   ;;  %s1617_s27 = sphi %s1674_s27, %s1926_s27   ;;  %s1613_s26 = sphi %s1672_s26, %s1925_s26   ;;  %s1609_s25 = sphi %s1670_s25, %s1924_s25   ;;  %s1605_s24 = sphi %s1668_s24, %s1923_s24  }
   0x5   : > { %s1693_s30 = sadd.s32 1, %s1617_s27   ;;  %s180_s8 = sadd.s32 1, %s1613_s26 }
   0x6   : > { %s177_s9 = ssub.s32 %s1617_s27, %s1693_s30  ;;  %p190_p0 = scmp.ne.s32.totalorder %s1613_s26, %s1609_s25 }
   0x7   : > { %p178_p1 = scmp.eq.s32.totalorder %s177_s9, 0  ;;  %p191_p2 = scmp.eq.s32.totalorder %s1689_s28, 3 }
   0x8   : > { %p196_p3 = scmp.ne.s32.totalorder %s1609_s25, %s1605_s24  ;;  %p197_p4 = scmp.eq.s32.totalorder %s1202_s29, 3 }
   0x9   : > { %s1704_s10 = scalar_select %p178_p1, %s1613_s26, %s180_s8  }
   0xa   : > { %p1706_p5 = por %p191_p2, %p190_p0  ;;  %p1710_p6 = por %p197_p4, %p196_p3 }
   0xb   : > { %p1203_p7 = scmp.ge.s32.totalorder %s1617_s27, 1  ;;  %p204_p8 = scmp.lt.s32.totalorder %s1617_s27, 5 }
   0xc   : > { %s1914_s11 = scalar_select %p1706_p5, 1, 0 }
   0xd   : > { %s1915_s12 = scalar_select %p1710_p6, 1, 0 }
   0xe   : > { %p1911_p9 = scmp.eq.s32.totalorder %s1689_s28, 0  ;;  %p1717_p10 = pnand %p1203_p7, %p204_p8 }
   0xf   : > { %s1619_s14 = smov [#allocation2]   ;;  %s1523_s19 = scalar_lea.hbm %s1908_s5, 7168 }
  0x10   : > { %s1916_s13 = scalar_select %p1717_p10, 1, 0 }
  0x11   : > { %s228_s15 = sshll.u32 %s1619_s14, 4  ;;  %p1356_p11 = pneg %p1717_p10  ;;  %s229_s15 = int_to_ptr.vmem [resolvable:$true] %s228_s15 }
  0x12   : > { %p1524_p13 = scmp.ne.s32.totalorder %s1908_s5, %s1523_s19  ;;  %p1530_p3 = scmp.lt.u32.totalorder %s1523_s19, %s1908_s5 }
  0x13   : > { %p1725_p12 = pnand %p1911_p9, %p1356_p11 }
  0x15   : > { %p1525_p0 = pneg %p1725_p12 }
  0x17   : > { %p1526_p1 = pnand %p1525_p0, %p1524_p13 }
  0x19   : > { %p1527_p2 = pneg %p1526_p1 }
  0x1b   : > { %p1532_p4 = pnand %p1530_p3, %p1527_p2 }
  0x1d   : > { %1535 = shalt.err (!%p1532_p4)
}
  0x1e   : > { %s1536_s29 = scalar_lea.vmem %s229_s15, 7168  ;;  %p1544_p9 = scmp.lt.s32.totalorder %s229_s15, %s229_s15 }
  0x1f   : > { %p1537_p7 = scmp.ne.s32.totalorder %s229_s15, %s1536_s29  ;;  %p1545_p6 = scmp.lt.s32.totalorder %s1536_s29, %s1536_s29 }
  0x21   : > { %p1539_p8 = pnand %p1537_p7, %p1525_p0  ;;  %p1546_p5 = por %p1545_p6, %p1544_p9 }
  0x23   : > { %p1540_p11 = pneg %p1539_p8 }
  0x25   : > { %p1547_p10 = pnand %p1546_p5, %p1540_p11 }
  0x27   : > { %1550 = shalt.err (!%p1547_p10)
}
  0x28   : > { %s1620_s8 = smov 448   ;;  %s1621_s9 = smov 28  }
  0x29   : > { %1359 = dma.hbm_to_vmem [thread:$0]  (!%p1725_p12), %s1908_s5, 7168, %s229_s15, [#allocation3], %s1620_s8, %s1620_s8, %s1621_s9  }
  0x2a   : > { %p1918_p13 = scmp.ne.s32.totalorder %s1916_s13, 0 }
  0x2b   : > { %p1919_p1 = scmp.eq.s32.totalorder (!%p1918_p13), %s1689_s28, 0 }
  0x2c   : > { %256 = sbr.rel (%p1918_p13) target bundleno = 788 (0x314), region = 48 }
  0x33   : > { %1596 = dma.done.wait (%p1919_p1), [#allocation3], 7168   ;;  %p1920_p0 = pmov %p1919_p1 }
  0x34   : > { %s1208_s18 = sshll.u32 %s1689_s28, 1  ;;  %v1622_v0 = vmov 0.0   ;;  %vm1623_vm0 = vmmov 0   ;;  %vm311_vm1 = vcmask 1043456   ;;  %v299_v1 = vld [vmem:[%s1904_s1] sm:$0xf] }
  0x35   : > { %1598 = vsyncadd (%p1920_p0), [#allocation3], 4294960128  ;;  %1302 = vmatprep.subr.bf16.mxu0 %v1622_v0  ;;  %1304 = vmatprep.mubr.msk.bf16.mxu0 %vm1623_vm0, %v1622_v0  ;;  %p289_p5 = scmp.lt.s32.totalorder %s1208_s18, 7  ;;  %v313_v4 = vsel %vm311_vm1, %v299_v1, 0  ;;  %v1407_v6 = vld [vmem:[%s1906_s3] sm:$0xff]   ;;  %vm307_vm2 = vcmask 64512  }
  0x36   : > { %1308 = vmatprep.subr.bf16.mxu1 %v1622_v0  ;;  %1324 = vmatprep.mubr.msk.bf16.mxu1 %vm1623_vm0, %v1622_v0  ;;  %v1408_v7 = vld [vmem:[%s1906_s3 + $0x8] sm:$0xff]   ;;  %v1409_v8 = vld [vmem:[%s1906_s3 + $0x10] sm:$0xff]   ;;  %v1410_v9 = vld [vmem:[%s1906_s3 + $0x18] sm:$0xff]   ;;  %v1624_v59 = vmov 0   ;;  %p1921_p9 = scmp.ne.s32.totalorder %s1914_s11, 0  ;;  %s1625_s8 = smov [#allocation5]  }
  0x37   : > { %s1928_s18 = smov (!%p289_p5, %s1208_s18), 7  ;;  %1303 = vmatpush3.bf16.msra.mxu0 %v313_v4  ;;  %1309 = vmatpush3.bf16.msra.mxu1 %v1407_v6  ;;  %v1411_v10 = vld [vmem:[%s1906_s3 + $0x20] sm:$0xff]   ;;  %v1412_v11 = vld [vmem:[%s1906_s3 + $0x28] sm:$0xff]   ;;  %v1413_v12 = vld [vmem:[%s1906_s3 + $0x30] sm:$0xff]   ;;  %s1555_s9 = sshll.u32 %s1625_s8, 4  ;;  %s1556_s9 = int_to_ptr.vmem [resolvable:$false] %s1555_s9 }
  0x38   : > { %s1209_s13 = sshll.u32 %s1928_s18, 3  ;;  %1310 = vmatprep.subr.bf16.mxu1 %v1622_v0  ;;  %v1414_v13 = vld [vmem:[%s1906_s3 + $0x38] sm:$0xff]   ;;  %v1417_v15 = vld [vmem:[#allocation2 + $0x4] ss:$28 sps:$4 sm:$0xff]   ;;  %v1420_v16 = vld [vmem:[#allocation2 + $0xc] ss:$28 sps:$4 sm:$0xff]  }
  0x39   : > { %s292_s19 = scalar_lea.vmem %s1903_s0, %s1209_s13  ;;  %v1415_v14 = vld [vmem:[#allocation2] ss:$28 sps:$4 sm:$0xff]   ;;  %873 = vmatprep.subr.bf16.mxu0 %v1417_v15  ;;  %v1421_v18 = vld [vmem:[#allocation2 + $0x38] ss:$28 sps:$4 sm:$0xff]   ;;  %v1427_v20 = vld [vmem:[#allocation2 + $0x70] ss:$28 sps:$4 sm:$0xff]  }
  0x3a   : > { %v296_v2 = vld [vmem:[%s292_s19] sm:$0xff]  ;;  %v297_v3 = vld [vmem:[%s292_s19 + $0x8] sm:$0xff]  ;;  %v1423_v17 = vld [vmem:[#allocation2 + $0x3c] ss:$28 sps:$4 sm:$0xff]   ;;  %s285_s13 = sand.u32 1, %s1609_s25   ;;  %s1349_s19 = smul.u32 1792, %s1689_s28 }
  0x3b   : > { %v298_v5 = vpack.c.bf16 %v297_v3, %v296_v2  ;;  %1311 = vmatpush3.bf16.msra.mxu1 %v1408_v7  ;;  %v1429_v19 = vld [vmem:[#allocation2 + $0x74] ss:$28 sps:$4 sm:$0xff]   ;;  %v1435_v21 = vld [vmem:[#allocation2 + $0xac] ss:$28 sps:$4 sm:$0xff]   ;;  %v1441_v23 = vld [vmem:[#allocation2 + $0xe4] ss:$28 sps:$4 sm:$0xff]  }
  0x3c   : > { %1312 = vmatprep.subr.bf16.mxu1 %v1622_v0  ;;  %v1433_v22 = vld [vmem:[#allocation2 + $0xa8] ss:$28 sps:$4 sm:$0xff]   ;;  %v1439_v24 = vld [vmem:[#allocation2 + $0xe0] ss:$28 sps:$4 sm:$0xff]   ;;  %v1445_v26 = vld [vmem:[#allocation2 + $0x118] ss:$28 sps:$4 sm:$0xff]   ;;  %s1853_s28 = scalar_lea.hbm %s1910_s7, %s1349_s19 }
  0x3d   : > { %1305 = vmatmul.mubr.msk.bf16.vlgmr.msra.gmra.mrb[0].mxu0 %vm307_vm2, %v298_v5  ;;  %v1447_v25 = vld [vmem:[#allocation2 + $0x11c] ss:$28 sps:$4 sm:$0xff]   ;;  %v1210_v27 = vld [vmem:[%s1905_s2] ss:$0 sm:$0xff]  ;;  %v1418_v38 = vld [vmem:[#allocation2 + $0x8] ss:$28 sps:$4 sm:$0xff]  }
  0x3e   : > { %874 = vmatpush1.bf16.msra.mxu0 %v1415_v14  ;;  %v1426_v40 = vld [vmem:[#allocation2 + $0x44] ss:$28 sps:$4 sm:$0xff]   ;;  %v1432_v42 = vld [vmem:[#allocation2 + $0x7c] ss:$28 sps:$4 sm:$0xff]   ;;  %v1438_v44 = vld [vmem:[#allocation2 + $0xb4] ss:$28 sps:$4 sm:$0xff]   ;;  %905 = vmatprep.mubr.bf16.mxu0 %v1624_v59 }
  0x3f   : > { %1313 = vmatpush3.bf16.msra.mxu1 %v1409_v8  ;;  %875 = vmatprep.subr.bf16.mxu0 %v1423_v17  ;;  %v1424_v41 = vld [vmem:[#allocation2 + $0x40] ss:$28 sps:$4 sm:$0xff]   ;;  %v1430_v43 = vld [vmem:[#allocation2 + $0x78] ss:$28 sps:$4 sm:$0xff]   ;;  %v1436_v45 = vld [vmem:[#allocation2 + $0xb0] ss:$28 sps:$4 sm:$0xff]  }
  0x40   : > { %1314 = vmatprep.subr.bf16.mxu1 %v1622_v0  ;;  %v1444_v46 = vld [vmem:[#allocation2 + $0xec] ss:$28 sps:$4 sm:$0xff]   ;;  %v1450_v48 = vld [vmem:[#allocation2 + $0x124] ss:$28 sps:$4 sm:$0xff]   ;;  %v1453_v50 = vld [vmem:[#allocation2 + $0x154] ss:$28 sps:$4 sm:$0xff]  }
  0x41   : > { %v1442_v47 = vld [vmem:[#allocation2 + $0xe8] ss:$28 sps:$4 sm:$0xff]   ;;  %v1448_v49 = vld [vmem:[#allocation2 + $0x120] ss:$28 sps:$4 sm:$0xff]   ;;  %v1451_v52 = vld [vmem:[#allocation2 + $0x150] ss:$28 sps:$4 sm:$0xff]  }
  0x42   : > { %876 = vmatpush1.bf16.msra.mxu0 %v1421_v18  ;;  %v1456_v51 = vld [vmem:[#allocation2 + $0x15c] ss:$28 sps:$4 sm:$0xff]   ;;  %v1459_v54 = vld [vmem:[#allocation2 + $0x18c] ss:$28 sps:$4 sm:$0xff]   ;;  %v1462_v55 = vld [vmem:[#allocation2 + $0x194] ss:$28 sps:$4 sm:$0xff]  }
  0x43   : > { %1315 = vmatpush3.bf16.msra.mxu1 %v1410_v9  ;;  %877 = vmatprep.subr.bf16.mxu0 %v1429_v19  ;;  %v1454_v53 = vld [vmem:[#allocation2 + $0x158] ss:$28 sps:$4 sm:$0xff]   ;;  %v1457_v56 = vld [vmem:[#allocation2 + $0x188] ss:$28 sps:$4 sm:$0xff]   ;;  %v1460_v57 = vld [vmem:[#allocation2 + $0x190] ss:$28 sps:$4 sm:$0xff]  }
  0x44   : > { %1316 = vmatprep.subr.bf16.mxu1 %v1622_v0  ;;  %v1465_v58 = vld [vmem:[#allocation2 + $0x14] ss:$28 sps:$4 sm:$0xff]   ;;  %v1212_v60 = vld [vmem:[%s1907_s4] ss:$0 sm:$0xff]  ;;  %v1467_v14 = vld [vmem:[#allocation2 + $0x48] ss:$28 sps:$4 sm:$0xff]  }
  0x45   : > { %v1470_v15 = vld [vmem:[#allocation2 + $0x50] ss:$28 sps:$4 sm:$0xff]   ;;  %v1471_v17 = vld [vmem:[#allocation2 + $0x80] ss:$28 sps:$4 sm:$0xff]   ;;  %v1474_v18 = vld [vmem:[#allocation2 + $0x88] ss:$28 sps:$4 sm:$0xff]  }
  0x46   : > { %878 = vmatpush1.bf16.msra.mxu0 %v1427_v20  ;;  %v1477_v19 = vld [vmem:[#allocation2 + $0xbc] ss:$28 sps:$4 sm:$0xff]   ;;  %s1348_s15 = smul.u32 112, %s285_s13  ;;  %s1862_s23 = scalar_lea.sflag [#allocation4], %s285_s13 }
  0x47   : > { %1317 = vmatpush3.bf16.msra.mxu1 %v1411_v10  ;;  %879 = vmatprep.subr.bf16.mxu0 %v1435_v21  ;;  %v1463_v10 = vld [vmem:[#allocation2 + $0x10] ss:$28 sps:$4 sm:$0xff]   ;;  %v1475_v20 = vld [vmem:[#allocation2 + $0xb8] ss:$28 sps:$4 sm:$0xff]   ;;  %v1478_v21 = vld [vmem:[#allocation2 + $0xc0] ss:$28 sps:$4 sm:$0xff]  }
  0x48   : > { %1318 = vmatprep.subr.bf16.mxu1 %v1622_v0  ;;  %s1829_s16 = scalar_lea.vmem [#allocation5], %s1348_s15  ;;  %s1557_s14 = scalar_lea.vmem %s1556_s9, 3584 }
  0x49   : > { %s1128_s20 = sshll.u32 %s1829_s16, 4  ;;  %s1856_s20 = int_to_ptr.vmem [resolvable:$true] %s1128_s20 }
  0x4a   : > { %880 = vmatpush1.bf16.msra.mxu0 %v1433_v22  ;;  %v1481_v22 = vld [vmem:[#allocation2 + $0xf4] ss:$28 sps:$4 sm:$0xff]   ;;  %s1551_s29 = scalar_lea.vmem %s1856_s20, 1792  ;;  %p1558_p2 = scmp.lt.s32.totalorder %s1856_s20, %s1556_s9 }
  0x4b   : > { %1319 = vmatpush3.bf16.msra.mxu1 %v1412_v11  ;;  %881 = vmatprep.subr.bf16.mxu0 %v1441_v23  ;;  %v1466_v11 = vld [vmem:[#allocation2 + $0x18] ss:$28 sps:$4 sm:$0xff]   ;;  %v1479_v23 = vld [vmem:[#allocation2 + $0xf0] ss:$28 sps:$4 sm:$0xff]   ;;  %p1552_p6 = scmp.ne.s32.totalorder %s1856_s20, %s1551_s29  ;;  %p1559_p3 = scmp.lt.s32.totalorder %s1557_s14, %s1551_s29 }
  0x4c   : > { %1320 = vmatprep.subr.bf16.mxu1 %v1622_v0 }
  0x4d   : > { %p1553_p10 = pnand %p1552_p6, %p1921_p9  ;;  %p1560_p4 = por %p1559_p3, %p1558_p2 }
  0x4e   : > { %882 = vmatpush1.bf16.msra.mxu0 %v1439_v24  ;;  %v1482_v24 = vld [vmem:[#allocation2 + $0xf8] ss:$28 sps:$4 sm:$0xff]  }
  0x4f   : > { %1321 = vmatpush3.bf16.msra.mxu1 %v1413_v12  ;;  %883 = vmatprep.subr.bf16.mxu0 %v1447_v25  ;;  %v1485_v25 = vld [vmem:[#allocation2 + $0x12c] ss:$28 sps:$4 sm:$0xff]   ;;  %p1554_p12 = pneg %p1553_p10 }
  0x50   : > { %1322 = vmatprep.subr.bf16.mxu1 %v1622_v0 }
  0x51   : > { %p1561_p7 = pnand %p1560_p4, %p1554_p12 }
  0x52   : > { %884 = vmatpush1.bf16.msra.mxu0 %v1445_v26  ;;  %v1483_v26 = vld [vmem:[#allocation2 + $0x128] ss:$28 sps:$4 sm:$0xff]  }
  0x53   : > { %1323 = vmatpush3.bf16.msra.mxu1 %v1414_v13  ;;  %885 = vmatprep.subr.bf16.mxu0 %v1453_v50  ;;  %v1469_v13 = vld [vmem:[#allocation2 + $0x4c] ss:$28 sps:$4 sm:$0xff]  }
  0x54   : > { %916 = vmatprep.subr.bf16.mxu1 %v1420_v16  ;;  %v1473_v16 = vld [vmem:[#allocation2 + $0x84] ss:$28 sps:$4 sm:$0xff]  }
  0x56   : > { %886 = vmatpush1.bf16.msra.mxu0 %v1451_v52 }
  0x57   : > { %887 = vmatprep.subr.bf16.mxu0 %v1459_v54 }
  0x5a   : > { %888 = vmatpush1.bf16.msra.mxu0 %v1457_v56 }
  0x5b   : > { %959 = vmatprep.subr.bf16.mxu0 %v1465_v58 }
 0x110   : > { %v349_v28 = vpop.f32.mrb[0].mxu0 }
 0x111   : > { %v350_v29 = vadd.f32 %v1210_v27, %v349_v28  ;;  %v1306_v30 = vpop.f32.mrb[1].mxu0  ;;  %v1489_v28 = vld [vmem:[#allocation2 + $0x164] ss:$28 sps:$4 sm:$0xff]  }
 0x112   : > { %v352_v31 = vpop.f32.mrb[2].mxu0  ;;  %v1490_v30 = vld [vmem:[#allocation2 + $0x168] ss:$28 sps:$4 sm:$0xff]  }
 0x113   : > { %v358_v32 = vmul.f32 0.01, %v350_v29  ;;  %v353_v33 = vadd.f32 %v1210_v27, %v352_v31  ;;  %v1307_v34 = vpop.f32.mrb[3].mxu0  ;;  %vm356_vm3 = vcmp.gt.f32.partialorder %v350_v29, 0.0  ;;  %v1486_v27 = vld [vmem:[#allocation2 + $0x130] ss:$28 sps:$4 sm:$0xff]  }
 0x114   : > { %v1493_v31 = vld [vmem:[#allocation2 + $0x19c] ss:$28 sps:$4 sm:$0xff]   ;;  %v550_v34 = vlaneseq }
 0x115   : > { %vm357_vm4 = vcmp.gt.f32.partialorder %v353_v33, 0.0  ;;  %v359_v35 = vmul.f32 0.01, %v353_v33  ;;  %v360_v36 = vsel %vm356_vm3, %v350_v29, %v358_v32  ;;  %v1487_v29 = vld [vmem:[#allocation2 + $0x160] ss:$28 sps:$4 sm:$0xff]  }
 0x116   : > { %v1491_v32 = vld [vmem:[#allocation2 + $0x198] ss:$28 sps:$4 sm:$0xff]  }
 0x117   : > { %v361_v37 = vsel %vm357_vm4, %v353_v33, %v359_v35  ;;  %v1494_v33 = vld [vmem:[#allocation2 + $0x1a0] ss:$28 sps:$4 sm:$0xff]   ;;  %v1811_v35 = vshrl.u32 %v550_v34, 7 }
 0x118   : > { %v362_v39 = vpack.c.bf16 %v361_v37, %v360_v36 }
 0x11a   : > { %1325 = vmatmul.mubr.bf16.vlgmr.msra.gmra.mrb[0].mxu1 %v362_v39  ;;  %v556_v39 = vsub.s32 1, %v1811_v35 }
 0x11b   : > { %917 = vmatpush1.bf16.msra.mxu1 %v1418_v38  ;;  %948 = vmatprep.mubr.bf16.mxu1 %v1624_v59  ;;  %v1818_v38 = vld [vmem:[%s1909_s6] sm:$0xff] }
 0x11c   : > { %918 = vmatprep.subr.bf16.mxu1 %v1426_v40 }
 0x11f   : > { %919 = vmatpush1.bf16.msra.mxu1 %v1424_v41 }
 0x120   : > { %920 = vmatprep.subr.bf16.mxu1 %v1432_v42  ;;  %v557_v42 = vrot.slane %v1818_v38, %v556_v39 }
 0x123   : > { %921 = vmatpush1.bf16.msra.mxu1 %v1430_v43 }
 0x124   : > { %922 = vmatprep.subr.bf16.mxu1 %v1438_v44 }
 0x127   : > { %923 = vmatpush1.bf16.msra.mxu1 %v1436_v45 }
 0x128   : > { %924 = vmatprep.subr.bf16.mxu1 %v1444_v46 }
 0x12b   : > { %925 = vmatpush1.bf16.msra.mxu1 %v1442_v47 }
 0x12c   : > { %926 = vmatprep.subr.bf16.mxu1 %v1450_v48 }
 0x12f   : > { %927 = vmatpush1.bf16.msra.mxu1 %v1448_v49 }
 0x130   : > { %928 = vmatprep.subr.bf16.mxu1 %v1456_v51 }
 0x133   : > { %929 = vmatpush1.bf16.msra.mxu1 %v1454_v53 }
 0x134   : > { %930 = vmatprep.subr.bf16.mxu1 %v1462_v55 }
 0x137   : > { %931 = vmatpush1.bf16.msra.mxu1 %v1460_v57 }
 0x138   : > { %1328 = vmatprep.subr.bf16.mxu1 %v1622_v0 }
 0x1ed   : > { %v468_v61 = vpop.f32.mrb[0].mxu1 }
 0x1ee   : > { %v469_v62 = vadd.f32 %v1212_v60, %v468_v61  ;;  %v1326_v63 = vpop.f32.mrb[1].mxu1 }
 0x1ef   : > { %v471_v1 = vpop.f32.mrb[2].mxu1 }
 0x1f0   : > { %v475_v2 = vadd.f32 %v469_v62, %v360_v36  ;;  %v472_v3 = vadd.f32 %v1212_v60, %v471_v1  ;;  %v1327_v4 = vpop.f32.mrb[3].mxu1  ;;  %v552_v36 = vsub.s32 0, %v1811_v35 }
 0x1f2   : > { %v479_v5 = vmul.f32 0.01, %v475_v2  ;;  %v476_v6 = vadd.f32 %v472_v3, %v361_v37  ;;  %vm477_vm5 = vcmp.gt.f32.partialorder %v475_v2, 0.0  ;;  %v560_v37 = vsub.s32 2, %v1811_v35 }
 0x1f3   : > { %v553_v40 = vrot.slane %v1818_v38, %v552_v36 }
 0x1f4   : > { %vm478_vm6 = vcmp.gt.f32.partialorder %v476_v6, 0.0  ;;  %v480_v7 = vmul.f32 0.01, %v476_v6  ;;  %v481_v8 = vsel %vm477_vm5, %v475_v2, %v479_v5  ;;  %v561_v41 = vrot.slane %v1818_v38, %v560_v37 }
 0x1f6   : > { %v482_v9 = vsel %vm478_vm6, %v476_v6, %v480_v7 }
 0x1f7   : > { %v483_v12 = vpack.c.bf16 %v482_v9, %v481_v8 }
 0x1f9   : > { %906 = vmatmul.mubr.bf16.vlgmr.msra.gmra.mrb[4].mxu0 %v483_v12  ;;  %949 = vmatmul.mubr.bf16.vlgmr.msra.gmra.mrb[4].mxu1 %v483_v12 }
 0x1fa   : > { %960 = vmatpush1.bf16.msra.mxu0 %v1463_v10  ;;  %1329 = vmatpush3.bf16.msra.mxu1 %v1466_v11 }
 0x1fb   : > { %961 = vmatprep.subr.bf16.mxu0 %v1469_v13  ;;  %1330 = vmatprep.subr.bf16.mxu1 %v1622_v0 }
 0x1fc   : > { %991 = vmatprep.mubr.bf16.mxu0 %v1624_v59  ;;  %1344 = vmatprep.mubr.msk.bf16.mxu1 %vm1623_vm0, %v1622_v0 }
 0x1fe   : > { %962 = vmatpush1.bf16.msra.mxu0 %v1467_v14  ;;  %1331 = vmatpush3.bf16.msra.mxu1 %v1470_v15 }
 0x1ff   : > { %963 = vmatprep.subr.bf16.mxu0 %v1473_v16  ;;  %1332 = vmatprep.subr.bf16.mxu1 %v1622_v0 }
 0x202   : > { %964 = vmatpush1.bf16.msra.mxu0 %v1471_v17  ;;  %1333 = vmatpush3.bf16.msra.mxu1 %v1474_v18 }
 0x203   : > { %965 = vmatprep.subr.bf16.mxu0 %v1477_v19  ;;  %1334 = vmatprep.subr.bf16.mxu1 %v1622_v0 }
 0x206   : > { %966 = vmatpush1.bf16.msra.mxu0 %v1475_v20  ;;  %1335 = vmatpush3.bf16.msra.mxu1 %v1478_v21 }
 0x207   : > { %967 = vmatprep.subr.bf16.mxu0 %v1481_v22  ;;  %1336 = vmatprep.subr.bf16.mxu1 %v1622_v0 }
 0x20a   : > { %968 = vmatpush1.bf16.msra.mxu0 %v1479_v23  ;;  %1337 = vmatpush3.bf16.msra.mxu1 %v1482_v24 }
 0x20b   : > { %969 = vmatprep.subr.bf16.mxu0 %v1485_v25  ;;  %1338 = vmatprep.subr.bf16.mxu1 %v1622_v0 }
 0x20e   : > { %970 = vmatpush1.bf16.msra.mxu0 %v1483_v26  ;;  %1339 = vmatpush3.bf16.msra.mxu1 %v1486_v27 }
 0x20f   : > { %971 = vmatprep.subr.bf16.mxu0 %v1489_v28  ;;  %1340 = vmatprep.subr.bf16.mxu1 %v1622_v0 }
 0x212   : > { %972 = vmatpush1.bf16.msra.mxu0 %v1487_v29  ;;  %1341 = vmatpush3.bf16.msra.mxu1 %v1490_v30  ;;  %v568_v29 = vsub.s32 4, %v1811_v35  ;;  %v576_v30 = vsub.s32 6, %v1811_v35 }
 0x213   : > { %973 = vmatprep.subr.bf16.mxu0 %v1493_v31  ;;  %1342 = vmatprep.subr.bf16.mxu1 %v1622_v0  ;;  %v564_v0 = vsub.s32 3, %v1811_v35  ;;  %v572_v31 = vsub.s32 5, %v1811_v35 }
 0x215   : > { %v565_v43 = vrot.slane %v1818_v38, %v564_v0  ;;  %v573_v34 = vrot.slane %v1818_v38, %v572_v31 }
 0x216   : > { %974 = vmatpush1.bf16.msra.mxu0 %v1491_v32  ;;  %1343 = vmatpush3.bf16.msra.mxu1 %v1494_v33  ;;  %v569_v32 = vrot.slane %v1818_v38, %v568_v29  ;;  %v577_v33 = vrot.slane %v1818_v38, %v576_v30 }
 0x219   : > { %992 = vmatmul.mubr.bf16.vlgmr.msra.gmra.mrb[8].mxu0 %v483_v12  ;;  %1345 = vmatmul.mubr.bf16.vlgmr.msra.gmra.mrb[8].mxu1 %v483_v12 }
 0x2cc   : > { %v907_v44 = vpop.f32.mrb[4].mxu0  ;;  %v950_v45 = vpop.f32.mrb[4].mxu1 }
 0x2cd   : > { %v908_v46 = vadd.f32 %v907_v44, %v553_v40  ;;  %v951_v47 = vadd.f32 %v950_v45, %v561_v41  ;;  %v909_v48 = vpop.f32.mrb[5].mxu0  ;;  %v952_v49 = vpop.f32.mrb[5].mxu1 }
 0x2ce   : > { %v910_v50 = vadd.f32 %v909_v48, %v557_v42  ;;  %v953_v51 = vadd.f32 %v952_v49, %v565_v43  ;;  %v911_v52 = vpop.f32.mrb[6].mxu0  ;;  %v954_v53 = vpop.f32.mrb[6].mxu1 }
 0x2cf   : > { %v1043_v54 = vmul.f32 0.5, %v908_v46  ;;  %v1045_v55 = vmul.f32 0.5, %v951_v47  ;;  %v912_v56 = vadd.f32 %v911_v52, %v553_v40  ;;  %v955_v57 = vadd.f32 %v954_v53, %v561_v41  ;;  %v913_v58 = vpop.f32.mrb[7].mxu0  ;;  %v956_v59 = vpop.f32.mrb[7].mxu1 }
 0x2d0   : > { %v1044_v60 = vmul.f32 0.5, %v910_v50  ;;  %v1046_v61 = vmul.f32 0.5, %v953_v51  ;;  %v914_v62 = vadd.f32 %v913_v58, %v557_v42  ;;  %v957_v63 = vadd.f32 %v956_v59, %v565_v43 }
 0x2d1   : > { %1495 = vtanh.f32 %v1043_v54  ;;  %v1050_v1 = vmul.f32 0.5, %v912_v56  ;;  %v1052_v2 = vmul.f32 0.5, %v955_v57 }
 0x2d2   : > { %1497 = vtanh.f32 %v1045_v55  ;;  %v1051_v3 = vmul.f32 0.5, %v914_v62  ;;  %v1053_v4 = vmul.f32 0.5, %v957_v63 }
 0x2d3   : > { %1499 = vtanh.f32 %v1044_v60 }
 0x2d4   : > { %1501 = vtanh.f32 %v1046_v61 }
 0x2d5   : > { %1503 = vtanh.f32 %v1050_v1 }
 0x2d6   : > { %1505 = vtanh.f32 %v1052_v2 }
 0x2d7   : > { %1507 = vtanh.f32 %v1051_v3 }
 0x2d8   : > { %1509 = vtanh.f32 %v1053_v4 }
 0x2db   : > { %v1496_v5 = vpop.eup %1495 }
 0x2dc   : > { %v1498_v6 = vpop.eup %1497  ;;  %v1071_v7 = vmul.f32 0.5, %v1496_v5 }
 0x2dd   : > { %v1500_v8 = vpop.eup %1499  ;;  %v1073_v9 = vmul.f32 0.5, %v1498_v6 }
 0x2de   : > { %v1502_v10 = vpop.eup %1501  ;;  %v1085_v11 = vadd.f32 0.5, %v1071_v7  ;;  %v1072_v12 = vmul.f32 0.5, %v1500_v8 }
 0x2df   : > { %v1504_v13 = vpop.eup %1503  ;;  %v1087_v14 = vadd.f32 0.5, %v1073_v9  ;;  %v1074_v15 = vmul.f32 0.5, %v1502_v10 }
 0x2e0   : > { %v1506_v16 = vpop.eup %1505  ;;  %1099 = vst [vmem:[%s1829_s16] sm:$0xff] %v1085_v11  ;;  %v1086_v17 = vadd.f32 0.5, %v1072_v12  ;;  %v1078_v18 = vmul.f32 0.5, %v1504_v13 }
 0x2e1   : > { %v1508_v19 = vpop.eup %1507  ;;  %1101 = vst [vmem:[%s1829_s16 + $0x10] sm:$0xff] %v1087_v14  ;;  %v1088_v20 = vadd.f32 0.5, %v1074_v15  ;;  %v1080_v21 = vmul.f32 0.5, %v1506_v16 }
 0x2e2   : > { %v1510_v22 = vpop.eup %1509  ;;  %1100 = vst [vmem:[%s1829_s16 + $0x8] sm:$0xff] %v1086_v17  ;;  %v1092_v23 = vadd.f32 0.5, %v1078_v18  ;;  %v1079_v24 = vmul.f32 0.5, %v1508_v19 }
 0x2e3   : > { %1102 = vst [vmem:[%s1829_s16 + $0x18] sm:$0xff] %v1088_v20  ;;  %v1094_v25 = vadd.f32 0.5, %v1080_v21  ;;  %v1081_v26 = vmul.f32 0.5, %v1510_v22 }
 0x2e4   : > { %1106 = vst [vmem:[%s1829_s16 + $0x38] sm:$0xff] %v1092_v23  ;;  %v1093_v27 = vadd.f32 0.5, %v1079_v24 }
 0x2e5   : > { %1108 = vst [vmem:[%s1829_s16 + $0x48] sm:$0xff] %v1094_v25  ;;  %v1095_v28 = vadd.f32 0.5, %v1081_v26 }
 0x2e6   : > { %1107 = vst [vmem:[%s1829_s16 + $0x40] sm:$0xff] %v1093_v27 }
 0x2e7   : > { %1109 = vst [vmem:[%s1829_s16 + $0x50] sm:$0xff] %v1095_v28 }
 0x2ec   : > { %v993_v36 = vpop.f32.mrb[8].mxu0  ;;  %v1036_v37 = vpop.f32.mrb[8].mxu1 }
 0x2ed   : > { %v994_v39 = vadd.f32 %v993_v36, %v569_v32  ;;  %v1037_v0 = vadd.f32 %v1036_v37, %v577_v33  ;;  %v995_v40 = vpop.f32.mrb[9].mxu0  ;;  %v1346_v41 = vpop.f32.mrb[9].mxu1 }
 0x2ee   : > { %v996_v42 = vadd.f32 %v995_v40, %v573_v34  ;;  %v997_v43 = vpop.f32.mrb[10].mxu0  ;;  %v1039_v44 = vpop.f32.mrb[10].mxu1 }
 0x2ef   : > { %v1047_v45 = vmul.f32 0.5, %v994_v39  ;;  %v1049_v46 = vmul.f32 0.5, %v1037_v0  ;;  %v998_v47 = vadd.f32 %v997_v43, %v569_v32  ;;  %v1040_v35 = vadd.f32 %v1039_v44, %v577_v33  ;;  %v999_v48 = vpop.f32.mrb[11].mxu0  ;;  %v1347_v49 = vpop.f32.mrb[11].mxu1 }
 0x2f0   : > { %v1048_v50 = vmul.f32 0.5, %v996_v42  ;;  %v1000_v51 = vadd.f32 %v999_v48, %v573_v34 }
 0x2f1   : > { %1511 = vtanh.f32 %v1047_v45  ;;  %v1054_v52 = vmul.f32 0.5, %v998_v47  ;;  %v1056_v38 = vmul.f32 0.5, %v1040_v35 }
 0x2f2   : > { %1513 = vtanh.f32 %v1049_v46  ;;  %v1055_v53 = vmul.f32 0.5, %v1000_v51 }
 0x2f3   : > { %1515 = vtanh.f32 %v1048_v50 }
 0x2f4   : > { %1517 = vtanh.f32 %v1054_v52 }
 0x2f5   : > { %1519 = vtanh.f32 %v1056_v38 }
 0x2f6   : > { %1521 = vtanh.f32 %v1055_v53 }
 0x2fb   : > { %v1512_v54 = vpop.eup %1511 }
 0x2fc   : > { %v1514_v55 = vpop.eup %1513  ;;  %v1075_v56 = vmul.f32 0.5, %v1512_v54 }
 0x2fd   : > { %v1516_v57 = vpop.eup %1515  ;;  %v1077_v58 = vmul.f32 0.5, %v1514_v55 }
 0x2fe   : > { %v1518_v59 = vpop.eup %1517  ;;  %v1089_v60 = vadd.f32 0.5, %v1075_v56  ;;  %v1076_v61 = vmul.f32 0.5, %v1516_v57 }
 0x2ff   : > { %v1520_v62 = vpop.eup %1519  ;;  %v1091_v63 = vadd.f32 0.5, %v1077_v58  ;;  %v1082_v1 = vmul.f32 0.5, %v1518_v59 }
 0x300   : > { %v1522_v2 = vpop.eup %1521  ;;  %1103 = vst [vmem:[%s1829_s16 + $0x20] sm:$0xff] %v1089_v60  ;;  %v1090_v3 = vadd.f32 0.5, %v1076_v61  ;;  %v1084_v4 = vmul.f32 0.5, %v1520_v62 }
 0x301   : > { %1105 = vst [vmem:[%s1829_s16 + $0x30] sm:$0xff] %v1091_v63  ;;  %v1096_v5 = vadd.f32 0.5, %v1082_v1  ;;  %v1083_v6 = vmul.f32 0.5, %v1522_v2 }
 0x302   : > { %1104 = vst [vmem:[%s1829_s16 + $0x28] sm:$0xff] %v1090_v3  ;;  %v1098_v7 = vadd.f32 0.5, %v1084_v4 }
 0x303   : > { %1110 = vst [vmem:[%s1829_s16 + $0x58] sm:$0xff] %v1096_v5  ;;  %v1097_v8 = vadd.f32 0.5, %v1083_v6 }
 0x304   : > { %1112 = vst [vmem:[%s1829_s16 + $0x68] sm:$0xff] %v1098_v7 }
 0x305   : > { %1111 = vst [vmem:[%s1829_s16 + $0x60] sm:$0xff] %v1097_v8 }
 0x306   : > { %1564 = shalt.err (!%p1561_p7)
}
 0x307   : > { %s1565_s17 = scalar_lea.hbm %s1853_s28, 1792  ;;  %s1569_s15 = scalar_lea.hbm %s1910_s7, 7168 }
 0x308   : > { %p1566_p8 = scmp.ne.s32.totalorder %s1853_s28, %s1565_s17  ;;  %p1570_p1 = scmp.lt.u32.totalorder %s1853_s28, %s1910_s7 }
 0x309   : > { %p1571_p0 = scmp.lt.u32.totalorder %s1569_s15, %s1565_s17  ;;  %p1573_p6 = scmp.lt.u32.totalorder %s1565_s17, %s1853_s28 }
 0x30a   : > { %p1567_p11 = pnand %p1566_p8, %p1921_p9 }
 0x30b   : > { %p1572_p5 = por %p1571_p0, %p1570_p1 }
 0x30c   : > { %p1568_p13 = pneg %p1567_p11 }
 0x30d   : > { %p1574_p10 = por %p1573_p6, %p1572_p5 }
 0x30f   : > { %p1575_p12 = pnand %p1574_p10, %p1568_p13 }
 0x311   : > { %1578 = shalt.err (!%p1575_p12)
}
 0x312   : > { %s1626_s21 = smov 896   ;;  %s1627_s22 = smov 56  }
 0x313   : > { %1354 = dma.vmem_to_hbm [thread:$0]  (%p1921_p9), %s1856_s20, 1792, %s1853_s28, %s1862_s23, %s1626_s21, %s1626_s21, %s1627_s22  }
 0x314 PF: > { %p1366_p2 = scmp.ge.s32.totalorder %s1617_s27, 2  ;;  %s1143_s29 = sand.u32 1, %s1605_s24  }
 0x315   : > { %p1922_p3 = scmp.ne.s32.totalorder %s1915_s12, 0  ;;  %s1144_s8 = scalar_lea.sflag [#allocation4], %s1143_s29 }
 0x317   : > { %p1361_p4 = pnand %p1366_p2, %p1922_p3 }
 0x319   : > { %1600 = dma.done.wait (!%p1361_p4), %s1144_s8, 1792  }
 0x31a   : > { %1602 = vsyncadd (!%p1361_p4), %s1144_s8, 4294965504  ;;  %p18_p7 = scmp.ge.s32.totalorder %s1693_s30, 6   ;;  %s1923_s24 = smov %s1609_s25 }
 0x31b   : > { %s1924_s25 = smov %s1613_s26  ;;  %s1925_s26 = smov %s1704_s10 }
 0x31c   : > { %s1926_s27 = smov %s1693_s30  ;;  %20 = sbr.rel (!%p18_p7) target bundleno = 4 (0x4), region = 88 }
 0x323   :  { %1149 = vsyncpa [#allocation3], 1 }
 0x324   :  { %1151 = vsyncpa [#allocation3 + $0x1], 1 }
 0x325   :  { %1152 = vsyncpa [#allocation4], 1 }
 0x326   :  { %1154 = vsyncpa [#allocation4 + $0x1], 1 }

// kernel: tpu_custom_call.1
= control target key start
LH: loop header
LB: loop body
LE: loop exit
PB: predicated region body
PF: predicated region fallthrough
CT: control target
= control target key end

     0   :  { %12 = vsyncpa [#allocation3], 0  ;;  %s1903_s0 = inlined_call_operand.vmem [shape: f32[64,8], index: 0, kind: input, shape index: {}]   ;;  %s1904_s1 = inlined_call_operand.vmem [shape: bf16[8,128], index: 1, kind: input, shape index: {}]   ;;  %s1905_s2 = inlined_call_operand.vmem [shape: f32[1,128], index: 2, kind: input, shape index: {}]   ;;  %s1906_s3 = inlined_call_operand.vmem [shape: bf16[128,128], index: 3, kind: input, shape index: {}]   ;;  %s1907_s4 = inlined_call_operand.vmem [shape: f32[1,128], index: 4, kind: input, shape index: {}]   ;;  %s1908_s5 = inlined_call_operand.hbm [shape: bf16[128,896], index: 5, kind: input, shape index: {}]   ;;  %s1909_s6 = inlined_call_operand.vmem [shape: f32[1,896], index: 6, kind: input, shape index: {}]   ;;  %s1910_s7 = inlined_call_operand.hbm [shape: f32[64,896], index: 7, kind: output, shape index: {}]  }
   0x1   :  { %13 = vsyncpa [#allocation4], 0 }
   0x2   :  { %15 = vsyncpa [#allocation4 + $0x1], 0  ;;  %s1668_s24 = smov 0   ;;  %s1670_s25 = smov 0  }
   0x3   :  { %s1672_s26 = smov 0   ;;  %s1674_s27 = smov 0  }
   0x4 LB: > { %s1689_s28 = sadd.s32 4294967295, %s1617_s27   ;;  %s1202_s29 = sadd.s32 4294967294, %s1617_s27   ;;  %s1617_s27 = sphi %s1674_s27, %s1926_s27   ;;  %s1613_s26 = sphi %s1672_s26, %s1925_s26   ;;  %s1609_s25 = sphi %s1670_s25, %s1924_s25   ;;  %s1605_s24 = sphi %s1668_s24, %s1923_s24  }
   0x5   : > { %s1693_s30 = sadd.s32 1, %s1617_s27   ;;  %s180_s8 = sadd.s32 1, %s1613_s26 }
   0x6   : > { %s177_s9 = ssub.s32 %s1617_s27, %s1693_s30  ;;  %p190_p0 = scmp.ne.s32.totalorder %s1613_s26, %s1609_s25 }
   0x7   : > { %p178_p1 = scmp.eq.s32.totalorder %s177_s9, 0  ;;  %p191_p2 = scmp.eq.s32.totalorder %s1689_s28, 3 }
   0x8   : > { %p196_p3 = scmp.ne.s32.totalorder %s1609_s25, %s1605_s24  ;;  %p197_p4 = scmp.eq.s32.totalorder %s1202_s29, 3 }
   0x9   : > { %s1704_s10 = scalar_select %p178_p1, %s1613_s26, %s180_s8  }
   0xa   : > { %p1706_p5 = por %p191_p2, %p190_p0  ;;  %p1710_p6 = por %p197_p4, %p196_p3 }
   0xb   : > { %p1203_p7 = scmp.ge.s32.totalorder %s1617_s27, 1  ;;  %p204_p8 = scmp.lt.s32.totalorder %s1617_s27, 5 }
   0xc   : > { %s1914_s11 = scalar_select %p1706_p5, 1, 0 }
   0xd   : > { %s1915_s12 = scalar_select %p1710_p6, 1, 0 }
   0xe   : > { %p1911_p9 = scmp.eq.s32.totalorder %s1689_s28, 0  ;;  %p1717_p10 = pnand %p1203_p7, %p204_p8 }
   0xf   : > { %s1619_s14 = smov [#allocation2]   ;;  %s1523_s19 = scalar_lea.hbm %s1908_s5, 7168 }
  0x10   : > { %s1916_s13 = scalar_select %p1717_p10, 1, 0 }
  0x11   : > { %s228_s15 = sshll.u32 %s1619_s14, 4  ;;  %p1356_p11 = pneg %p1717_p10  ;;  %s229_s15 = int_to_ptr.vmem [resolvable:$true] %s228_s15 }
  0x12   : > { %p1524_p13 = scmp.ne.s32.totalorder %s1908_s5, %s1523_s19  ;;  %p1530_p3 = scmp.lt.u32.totalorder %s1523_s19, %s1908_s5 }
  0x13   : > { %p1725_p12 = pnand %p1911_p9, %p1356_p11 }
  0x15   : > { %p1525_p0 = pneg %p1725_p12 }
  0x17   : > { %p1526_p1 = pnand %p1525_p0, %p1524_p13 }
  0x19   : > { %p1527_p2 = pneg %p1526_p1 }
  0x1b   : > { %p1532_p4 = pnand %p1530_p3, %p1527_p2 }
  0x1d   : > { %1535 = shalt.err (!%p1532_p4)
}
  0x1e   : > { %s1536_s29 = scalar_lea.vmem %s229_s15, 7168  ;;  %p1544_p9 = scmp.lt.s32.totalorder %s229_s15, %s229_s15 }
  0x1f   : > { %p1537_p7 = scmp.ne.s32.totalorder %s229_s15, %s1536_s29  ;;  %p1545_p6 = scmp.lt.s32.totalorder %s1536_s29, %s1536_s29 }
  0x21   : > { %p1539_p8 = pnand %p1537_p7, %p1525_p0  ;;  %p1546_p5 = por %p1545_p6, %p1544_p9 }
  0x23   : > { %p1540_p11 = pneg %p1539_p8 }
  0x25   : > { %p1547_p10 = pnand %p1546_p5, %p1540_p11 }
  0x27   : > { %1550 = shalt.err (!%p1547_p10)
}
  0x28   : > { %s1620_s8 = smov 448   ;;  %s1621_s9 = smov 28  }
  0x29   : > { %1359 = dma.hbm_to_vmem [thread:$0]  (!%p1725_p12), %s1908_s5, 7168, %s229_s15, [#allocation3], %s1620_s8, %s1620_s8, %s1621_s9  }
  0x2a   : > { %p1918_p13 = scmp.ne.s32.totalorder %s1916_s13, 0 }
  0x2b   : > { %p1919_p1 = scmp.eq.s32.totalorder (!%p1918_p13), %s1689_s28, 0 }
  0x2c   : > { %256 = sbr.rel (%p1918_p13) target bundleno = 788 (0x314), region = 48 }
  0x33   : > { %1596 = dma.done.wait (%p1919_p1), [#allocation3], 7168   ;;  %p1920_p0 = pmov %p1919_p1 }
  0x34   : > { %s1208_s18 = sshll.u32 %s1689_s28, 1  ;;  %v1622_v0 = vmov 0.0   ;;  %vm1623_vm0 = vmmov 0   ;;  %vm311_vm1 = vcmask 1043456   ;;  %v299_v1 = vld [vmem:[%s1904_s1] sm:$0xf] }
  0x35   : > { %1598 = vsyncadd (%p1920_p0), [#allocation3], 4294960128  ;;  %1302 = vmatprep.subr.bf16.mxu0 %v1622_v0  ;;  %1304 = vmatprep.mubr.msk.bf16.mxu0 %vm1623_vm0, %v1622_v0  ;;  %p289_p5 = scmp.lt.s32.totalorder %s1208_s18, 7  ;;  %v313_v4 = vsel %vm311_vm1, %v299_v1, 0  ;;  %v1407_v6 = vld [vmem:[%s1906_s3] sm:$0xff]   ;;  %vm307_vm2 = vcmask 64512  }
  0x36   : > { %1308 = vmatprep.subr.bf16.mxu1 %v1622_v0  ;;  %1324 = vmatprep.mubr.msk.bf16.mxu1 %vm1623_vm0, %v1622_v0  ;;  %v1408_v7 = vld [vmem:[%s1906_s3 + $0x8] sm:$0xff]   ;;  %v1409_v8 = vld [vmem:[%s1906_s3 + $0x10] sm:$0xff]   ;;  %v1410_v9 = vld [vmem:[%s1906_s3 + $0x18] sm:$0xff]   ;;  %v1624_v59 = vmov 0   ;;  %p1921_p9 = scmp.ne.s32.totalorder %s1914_s11, 0  ;;  %s1625_s8 = smov [#allocation5]  }
  0x37   : > { %s1928_s18 = smov (!%p289_p5, %s1208_s18), 7  ;;  %1303 = vmatpush3.bf16.msra.mxu0 %v313_v4  ;;  %1309 = vmatpush3.bf16.msra.mxu1 %v1407_v6  ;;  %v1411_v10 = vld [vmem:[%s1906_s3 + $0x20] sm:$0xff]   ;;  %v1412_v11 = vld [vmem:[%s1906_s3 + $0x28] sm:$0xff]   ;;  %v1413_v12 = vld [vmem:[%s1906_s3 + $0x30] sm:$0xff]   ;;  %s1555_s9 = sshll.u32 %s1625_s8, 4  ;;  %s1556_s9 = int_to_ptr.vmem [resolvable:$false] %s1555_s9 }
  0x38   : > { %s1209_s13 = sshll.u32 %s1928_s18, 3  ;;  %1310 = vmatprep.subr.bf16.mxu1 %v1622_v0  ;;  %v1414_v13 = vld [vmem:[%s1906_s3 + $0x38] sm:$0xff]   ;;  %v1417_v15 = vld [vmem:[#allocation2 + $0x4] ss:$28 sps:$4 sm:$0xff]   ;;  %v1420_v16 = vld [vmem:[#allocation2 + $0xc] ss:$28 sps:$4 sm:$0xff]  }
  0x39   : > { %s292_s19 = scalar_lea.vmem %s1903_s0, %s1209_s13  ;;  %v1415_v14 = vld [vmem:[#allocation2] ss:$28 sps:$4 sm:$0xff]   ;;  %873 = vmatprep.subr.bf16.mxu0 %v1417_v15  ;;  %v1421_v18 = vld [vmem:[#allocation2 + $0x38] ss:$28 sps:$4 sm:$0xff]   ;;  %v1427_v20 = vld [vmem:[#allocation2 + $0x70] ss:$28 sps:$4 sm:$0xff]  }
  0x3a   : > { %v296_v2 = vld [vmem:[%s292_s19] sm:$0xff]  ;;  %v297_v3 = vld [vmem:[%s292_s19 + $0x8] sm:$0xff]  ;;  %v1423_v17 = vld [vmem:[#allocation2 + $0x3c] ss:$28 sps:$4 sm:$0xff]   ;;  %s285_s13 = sand.u32 1, %s1609_s25   ;;  %s1349_s19 = smul.u32 1792, %s1689_s28 }
  0x3b   : > { %v298_v5 = vpack.c.bf16 %v297_v3, %v296_v2  ;;  %1311 = vmatpush3.bf16.msra.mxu1 %v1408_v7  ;;  %v1429_v19 = vld [vmem:[#allocation2 + $0x74] ss:$28 sps:$4 sm:$0xff]   ;;  %v1435_v21 = vld [vmem:[#allocation2 + $0xac] ss:$28 sps:$4 sm:$0xff]   ;;  %v1441_v23 = vld [vmem:[#allocation2 + $0xe4] ss:$28 sps:$4 sm:$0xff]  }
  0x3c   : > { %1312 = vmatprep.subr.bf16.mxu1 %v1622_v0  ;;  %v1433_v22 = vld [vmem:[#allocation2 + $0xa8] ss:$28 sps:$4 sm:$0xff]   ;;  %v1439_v24 = vld [vmem:[#allocation2 + $0xe0] ss:$28 sps:$4 sm:$0xff]   ;;  %v1445_v26 = vld [vmem:[#allocation2 + $0x118] ss:$28 sps:$4 sm:$0xff]   ;;  %s1853_s28 = scalar_lea.hbm %s1910_s7, %s1349_s19 }
  0x3d   : > { %1305 = vmatmul.mubr.msk.bf16.vlgmr.msra.gmra.mrb[0].mxu0 %vm307_vm2, %v298_v5  ;;  %v1447_v25 = vld [vmem:[#allocation2 + $0x11c] ss:$28 sps:$4 sm:$0xff]   ;;  %v1210_v27 = vld [vmem:[%s1905_s2] ss:$0 sm:$0xff]  ;;  %v1418_v38 = vld [vmem:[#allocation2 + $0x8] ss:$28 sps:$4 sm:$0xff]  }
  0x3e   : > { %874 = vmatpush1.bf16.msra.mxu0 %v1415_v14  ;;  %v1426_v40 = vld [vmem:[#allocation2 + $0x44] ss:$28 sps:$4 sm:$0xff]   ;;  %v1432_v42 = vld [vmem:[#allocation2 + $0x7c] ss:$28 sps:$4 sm:$0xff]   ;;  %v1438_v44 = vld [vmem:[#allocation2 + $0xb4] ss:$28 sps:$4 sm:$0xff]   ;;  %905 = vmatprep.mubr.bf16.mxu0 %v1624_v59 }
  0x3f   : > { %1313 = vmatpush3.bf16.msra.mxu1 %v1409_v8  ;;  %875 = vmatprep.subr.bf16.mxu0 %v1423_v17  ;;  %v1424_v41 = vld [vmem:[#allocation2 + $0x40] ss:$28 sps:$4 sm:$0xff]   ;;  %v1430_v43 = vld [vmem:[#allocation2 + $0x78] ss:$28 sps:$4 sm:$0xff]   ;;  %v1436_v45 = vld [vmem:[#allocation2 + $0xb0] ss:$28 sps:$4 sm:$0xff]  }
  0x40   : > { %1314 = vmatprep.subr.bf16.mxu1 %v1622_v0  ;;  %v1444_v46 = vld [vmem:[#allocation2 + $0xec] ss:$28 sps:$4 sm:$0xff]   ;;  %v1450_v48 = vld [vmem:[#allocation2 + $0x124] ss:$28 sps:$4 sm:$0xff]   ;;  %v1453_v50 = vld [vmem:[#allocation2 + $0x154] ss:$28 sps:$4 sm:$0xff]  }
  0x41   : > { %v1442_v47 = vld [vmem:[#allocation2 + $0xe8] ss:$28 sps:$4 sm:$0xff]   ;;  %v1448_v49 = vld [vmem:[#allocation2 + $0x120] ss:$28 sps:$4 sm:$0xff]   ;;  %v1451_v52 = vld [vmem:[#allocation2 + $0x150] ss:$28 sps:$4 sm:$0xff]  }
  0x42   : > { %876 = vmatpush1.bf16.msra.mxu0 %v1421_v18  ;;  %v1456_v51 = vld [vmem:[#allocation2 + $0x15c] ss:$28 sps:$4 sm:$0xff]   ;;  %v1459_v54 = vld [vmem:[#allocation2 + $0x18c] ss:$28 sps:$4 sm:$0xff]   ;;  %v1462_v55 = vld [vmem:[#allocation2 + $0x194] ss:$28 sps:$4 sm:$0xff]  }
  0x43   : > { %1315 = vmatpush3.bf16.msra.mxu1 %v1410_v9  ;;  %877 = vmatprep.subr.bf16.mxu0 %v1429_v19  ;;  %v1454_v53 = vld [vmem:[#allocation2 + $0x158] ss:$28 sps:$4 sm:$0xff]   ;;  %v1457_v56 = vld [vmem:[#allocation2 + $0x188] ss:$28 sps:$4 sm:$0xff]   ;;  %v1460_v57 = vld [vmem:[#allocation2 + $0x190] ss:$28 sps:$4 sm:$0xff]  }
  0x44   : > { %1316 = vmatprep.subr.bf16.mxu1 %v1622_v0  ;;  %v1465_v58 = vld [vmem:[#allocation2 + $0x14] ss:$28 sps:$4 sm:$0xff]   ;;  %v1212_v60 = vld [vmem:[%s1907_s4] ss:$0 sm:$0xff]  ;;  %v1467_v14 = vld [vmem:[#allocation2 + $0x48] ss:$28 sps:$4 sm:$0xff]  }
  0x45   : > { %v1470_v15 = vld [vmem:[#allocation2 + $0x50] ss:$28 sps:$4 sm:$0xff]   ;;  %v1471_v17 = vld [vmem:[#allocation2 + $0x80] ss:$28 sps:$4 sm:$0xff]   ;;  %v1474_v18 = vld [vmem:[#allocation2 + $0x88] ss:$28 sps:$4 sm:$0xff]  }
  0x46   : > { %878 = vmatpush1.bf16.msra.mxu0 %v1427_v20  ;;  %v1477_v19 = vld [vmem:[#allocation2 + $0xbc] ss:$28 sps:$4 sm:$0xff]   ;;  %s1348_s15 = smul.u32 112, %s285_s13  ;;  %s1862_s23 = scalar_lea.sflag [#allocation4], %s285_s13 }
  0x47   : > { %1317 = vmatpush3.bf16.msra.mxu1 %v1411_v10  ;;  %879 = vmatprep.subr.bf16.mxu0 %v1435_v21  ;;  %v1463_v10 = vld [vmem:[#allocation2 + $0x10] ss:$28 sps:$4 sm:$0xff]   ;;  %v1475_v20 = vld [vmem:[#allocation2 + $0xb8] ss:$28 sps:$4 sm:$0xff]   ;;  %v1478_v21 = vld [vmem:[#allocation2 + $0xc0] ss:$28 sps:$4 sm:$0xff]  }
  0x48   : > { %1318 = vmatprep.subr.bf16.mxu1 %v1622_v0  ;;  %s1829_s16 = scalar_lea.vmem [#allocation5], %s1348_s15  ;;  %s1557_s14 = scalar_lea.vmem %s1556_s9, 3584 }
  0x49   : > { %s1128_s20 = sshll.u32 %s1829_s16, 4  ;;  %s1856_s20 = int_to_ptr.vmem [resolvable:$true] %s1128_s20 }
  0x4a   : > { %880 = vmatpush1.bf16.msra.mxu0 %v1433_v22  ;;  %v1481_v22 = vld [vmem:[#allocation2 + $0xf4] ss:$28 sps:$4 sm:$0xff]   ;;  %s1551_s29 = scalar_lea.vmem %s1856_s20, 1792  ;;  %p1558_p2 = scmp.lt.s32.totalorder %s1856_s20, %s1556_s9 }
  0x4b   : > { %1319 = vmatpush3.bf16.msra.mxu1 %v1412_v11  ;;  %881 = vmatprep.subr.bf16.mxu0 %v1441_v23  ;;  %v1466_v11 = vld [vmem:[#allocation2 + $0x18] ss:$28 sps:$4 sm:$0xff]   ;;  %v1479_v23 = vld [vmem:[#allocation2 + $0xf0] ss:$28 sps:$4 sm:$0xff]   ;;  %p1552_p6 = scmp.ne.s32.totalorder %s1856_s20, %s1551_s29  ;;  %p1559_p3 = scmp.lt.s32.totalorder %s1557_s14, %s1551_s29 }
  0x4c   : > { %1320 = vmatprep.subr.bf16.mxu1 %v1622_v0 }
  0x4d   : > { %p1553_p10 = pnand %p1552_p6, %p1921_p9  ;;  %p1560_p4 = por %p1559_p3, %p1558_p2 }
  0x4e   : > { %882 = vmatpush1.bf16.msra.mxu0 %v1439_v24  ;;  %v1482_v24 = vld [vmem:[#allocation2 + $0xf8] ss:$28 sps:$4 sm:$0xff]  }
  0x4f   : > { %1321 = vmatpush3.bf16.msra.mxu1 %v1413_v12  ;;  %883 = vmatprep.subr.bf16.mxu0 %v1447_v25  ;;  %v1485_v25 = vld [vmem:[#allocation2 + $0x12c] ss:$28 sps:$4 sm:$0xff]   ;;  %p1554_p12 = pneg %p1553_p10 }
  0x50   : > { %1322 = vmatprep.subr.bf16.mxu1 %v1622_v0 }
  0x51   : > { %p1561_p7 = pnand %p1560_p4, %p1554_p12 }
  0x52   : > { %884 = vmatpush1.bf16.msra.mxu0 %v1445_v26  ;;  %v1483_v26 = vld [vmem:[#allocation2 + $0x128] ss:$28 sps:$4 sm:$0xff]  }
  0x53   : > { %1323 = vmatpush3.bf16.msra.mxu1 %v1414_v13  ;;  %885 = vmatprep.subr.bf16.mxu0 %v1453_v50  ;;  %v1469_v13 = vld [vmem:[#allocation2 + $0x4c] ss:$28 sps:$4 sm:$0xff]  }
  0x54   : > { %916 = vmatprep.subr.bf16.mxu1 %v1420_v16  ;;  %v1473_v16 = vld [vmem:[#allocation2 + $0x84] ss:$28 sps:$4 sm:$0xff]  }
  0x56   : > { %886 = vmatpush1.bf16.msra.mxu0 %v1451_v52 }
  0x57   : > { %887 = vmatprep.subr.bf16.mxu0 %v1459_v54 }
  0x5a   : > { %888 = vmatpush1.bf16.msra.mxu0 %v1457_v56 }
  0x5b   : > { %959 = vmatprep.subr.bf16.mxu0 %v1465_v58 }
 0x110   : > { %v349_v28 = vpop.f32.mrb[0].mxu0 }
 0x111   : > { %v350_v29 = vadd.f32 %v1210_v27, %v349_v28  ;;  %v1306_v30 = vpop.f32.mrb[1].mxu0  ;;  %v1489_v28 = vld [vmem:[#allocation2 + $0x164] ss:$28 sps:$4 sm:$0xff]  }
 0x112   : > { %v352_v31 = vpop.f32.mrb[2].mxu0  ;;  %v1490_v30 = vld [vmem:[#allocation2 + $0x168] ss:$28 sps:$4 sm:$0xff]  }
 0x113   : > { %v358_v32 = vmul.f32 0.01, %v350_v29  ;;  %v353_v33 = vadd.f32 %v1210_v27, %v352_v31  ;;  %v1307_v34 = vpop.f32.mrb[3].mxu0  ;;  %vm356_vm3 = vcmp.gt.f32.partialorder %v350_v29, 0.0  ;;  %v1486_v27 = vld [vmem:[#allocation2 + $0x130] ss:$28 sps:$4 sm:$0xff]  }
 0x114   : > { %v1493_v31 = vld [vmem:[#allocation2 + $0x19c] ss:$28 sps:$4 sm:$0xff]   ;;  %v550_v34 = vlaneseq }
 0x115   : > { %vm357_vm4 = vcmp.gt.f32.partialorder %v353_v33, 0.0  ;;  %v359_v35 = vmul.f32 0.01, %v353_v33  ;;  %v360_v36 = vsel %vm356_vm3, %v350_v29, %v358_v32  ;;  %v1487_v29 = vld [vmem:[#allocation2 + $0x160] ss:$28 sps:$4 sm:$0xff]  }
 0x116   : > { %v1491_v32 = vld [vmem:[#allocation2 + $0x198] ss:$28 sps:$4 sm:$0xff]  }
 0x117   : > { %v361_v37 = vsel %vm357_vm4, %v353_v33, %v359_v35  ;;  %v1494_v33 = vld [vmem:[#allocation2 + $0x1a0] ss:$28 sps:$4 sm:$0xff]   ;;  %v1811_v35 = vshrl.u32 %v550_v34, 7 }
 0x118   : > { %v362_v39 = vpack.c.bf16 %v361_v37, %v360_v36 }
 0x11a   : > { %1325 = vmatmul.mubr.bf16.vlgmr.msra.gmra.mrb[0].mxu1 %v362_v39  ;;  %v556_v39 = vsub.s32 1, %v1811_v35 }
 0x11b   : > { %917 = vmatpush1.bf16.msra.mxu1 %v1418_v38  ;;  %948 = vmatprep.mubr.bf16.mxu1 %v1624_v59  ;;  %v1818_v38 = vld [vmem:[%s1909_s6] sm:$0xff] }
 0x11c   : > { %918 = vmatprep.subr.bf16.mxu1 %v1426_v40 }
 0x11f   : > { %919 = vmatpush1.bf16.msra.mxu1 %v1424_v41 }
 0x120   : > { %920 = vmatprep.subr.bf16.mxu1 %v1432_v42  ;;  %v557_v42 = vrot.slane %v1818_v38, %v556_v39 }
 0x123   : > { %921 = vmatpush1.bf16.msra.mxu1 %v1430_v43 }
 0x124   : > { %922 = vmatprep.subr.bf16.mxu1 %v1438_v44 }
 0x127   : > { %923 = vmatpush1.bf16.msra.mxu1 %v1436_v45 }
 0x128   : > { %924 = vmatprep.subr.bf16.mxu1 %v1444_v46 }
 0x12b   : > { %925 = vmatpush1.bf16.msra.mxu1 %v1442_v47 }
 0x12c   : > { %926 = vmatprep.subr.bf16.mxu1 %v1450_v48 }
 0x12f   : > { %927 = vmatpush1.bf16.msra.mxu1 %v1448_v49 }
 0x130   : > { %928 = vmatprep.subr.bf16.mxu1 %v1456_v51 }
 0x133   : > { %929 = vmatpush1.bf16.msra.mxu1 %v1454_v53 }
 0x134   : > { %930 = vmatprep.subr.bf16.mxu1 %v1462_v55 }
 0x137   : > { %931 = vmatpush1.bf16.msra.mxu1 %v1460_v57 }
 0x138   : > { %1328 = vmatprep.subr.bf16.mxu1 %v1622_v0 }
 0x1ed   : > { %v468_v61 = vpop.f32.mrb[0].mxu1 }
 0x1ee   : > { %v469_v62 = vadd.f32 %v1212_v60, %v468_v61  ;;  %v1326_v63 = vpop.f32.mrb[1].mxu1 }
 0x1ef   : > { %v471_v1 = vpop.f32.mrb[2].mxu1 }
 0x1f0   : > { %v475_v2 = vadd.f32 %v469_v62, %v360_v36  ;;  %v472_v3 = vadd.f32 %v1212_v60, %v471_v1  ;;  %v1327_v4 = vpop.f32.mrb[3].mxu1  ;;  %v552_v36 = vsub.s32 0, %v1811_v35 }
 0x1f2   : > { %v479_v5 = vmul.f32 0.01, %v475_v2  ;;  %v476_v6 = vadd.f32 %v472_v3, %v361_v37  ;;  %vm477_vm5 = vcmp.gt.f32.partialorder %v475_v2, 0.0  ;;  %v560_v37 = vsub.s32 2, %v1811_v35 }
 0x1f3   : > { %v553_v40 = vrot.slane %v1818_v38, %v552_v36 }
 0x1f4   : > { %vm478_vm6 = vcmp.gt.f32.partialorder %v476_v6, 0.0  ;;  %v480_v7 = vmul.f32 0.01, %v476_v6  ;;  %v481_v8 = vsel %vm477_vm5, %v475_v2, %v479_v5  ;;  %v561_v41 = vrot.slane %v1818_v38, %v560_v37 }
 0x1f6   : > { %v482_v9 = vsel %vm478_vm6, %v476_v6, %v480_v7 }
 0x1f7   : > { %v483_v12 = vpack.c.bf16 %v482_v9, %v481_v8 }
 0x1f9   : > { %906 = vmatmul.mubr.bf16.vlgmr.msra.gmra.mrb[4].mxu0 %v483_v12  ;;  %949 = vmatmul.mubr.bf16.vlgmr.msra.gmra.mrb[4].mxu1 %v483_v12 }
 0x1fa   : > { %960 = vmatpush1.bf16.msra.mxu0 %v1463_v10  ;;  %1329 = vmatpush3.bf16.msra.mxu1 %v1466_v11 }
 0x1fb   : > { %961 = vmatprep.subr.bf16.mxu0 %v1469_v13  ;;  %1330 = vmatprep.subr.bf16.mxu1 %v1622_v0 }
 0x1fc   : > { %991 = vmatprep.mubr.bf16.mxu0 %v1624_v59  ;;  %1344 = vmatprep.mubr.msk.bf16.mxu1 %vm1623_vm0, %v1622_v0 }
 0x1fe   : > { %962 = vmatpush1.bf16.msra.mxu0 %v1467_v14  ;;  %1331 = vmatpush3.bf16.msra.mxu1 %v1470_v15 }
 0x1ff   : > { %963 = vmatprep.subr.bf16.mxu0 %v1473_v16  ;;  %1332 = vmatprep.subr.bf16.mxu1 %v1622_v0 }
 0x202   : > { %964 = vmatpush1.bf16.msra.mxu0 %v1471_v17  ;;  %1333 = vmatpush3.bf16.msra.mxu1 %v1474_v18 }
 0x203   : > { %965 = vmatprep.subr.bf16.mxu0 %v1477_v19  ;;  %1334 = vmatprep.subr.bf16.mxu1 %v1622_v0 }
 0x206   : > { %966 = vmatpush1.bf16.msra.mxu0 %v1475_v20  ;;  %1335 = vmatpush3.bf16.msra.mxu1 %v1478_v21 }
 0x207   : > { %967 = vmatprep.subr.bf16.mxu0 %v1481_v22  ;;  %1336 = vmatprep.subr.bf16.mxu1 %v1622_v0 }
 0x20a   : > { %968 = vmatpush1.bf16.msra.mxu0 %v1479_v23  ;;  %1337 = vmatpush3.bf16.msra.mxu1 %v1482_v24 }
 0x20b   : > { %969 = vmatprep.subr.bf16.mxu0 %v1485_v25  ;;  %1338 = vmatprep.subr.bf16.mxu1 %v1622_v0 }
 0x20e   : > { %970 = vmatpush1.bf16.msra.mxu0 %v1483_v26  ;;  %1339 = vmatpush3.bf16.msra.mxu1 %v1486_v27 }
 0x20f   : > { %971 = vmatprep.subr.bf16.mxu0 %v1489_v28  ;;  %1340 = vmatprep.subr.bf16.mxu1 %v1622_v0 }
 0x212   : > { %972 = vmatpush1.bf16.msra.mxu0 %v1487_v29  ;;  %1341 = vmatpush3.bf16.msra.mxu1 %v1490_v30  ;;  %v568_v29 = vsub.s32 4, %v1811_v35  ;;  %v576_v30 = vsub.s32 6, %v1811_v35 }
 0x213   : > { %973 = vmatprep.subr.bf16.mxu0 %v1493_v31  ;;  %1342 = vmatprep.subr.bf16.mxu1 %v1622_v0  ;;  %v564_v0 = vsub.s32 3, %v1811_v35  ;;  %v572_v31 = vsub.s32 5, %v1811_v35 }
 0x215   : > { %v565_v43 = vrot.slane %v1818_v38, %v564_v0  ;;  %v573_v34 = vrot.slane %v1818_v38, %v572_v31 }
 0x216   : > { %974 = vmatpush1.bf16.msra.mxu0 %v1491_v32  ;;  %1343 = vmatpush3.bf16.msra.mxu1 %v1494_v33  ;;  %v569_v32 = vrot.slane %v1818_v38, %v568_v29  ;;  %v577_v33 = vrot.slane %v1818_v38, %v576_v30 }
 0x219   : > { %992 = vmatmul.mubr.bf16.vlgmr.msra.gmra.mrb[8].mxu0 %v483_v12  ;;  %1345 = vmatmul.mubr.bf16.vlgmr.msra.gmra.mrb[8].mxu1 %v483_v12 }
 0x2cc   : > { %v907_v44 = vpop.f32.mrb[4].mxu0  ;;  %v950_v45 = vpop.f32.mrb[4].mxu1 }
 0x2cd   : > { %v908_v46 = vadd.f32 %v907_v44, %v553_v40  ;;  %v951_v47 = vadd.f32 %v950_v45, %v561_v41  ;;  %v909_v48 = vpop.f32.mrb[5].mxu0  ;;  %v952_v49 = vpop.f32.mrb[5].mxu1 }
 0x2ce   : > { %v910_v50 = vadd.f32 %v909_v48, %v557_v42  ;;  %v953_v51 = vadd.f32 %v952_v49, %v565_v43  ;;  %v911_v52 = vpop.f32.mrb[6].mxu0  ;;  %v954_v53 = vpop.f32.mrb[6].mxu1 }
 0x2cf   : > { %v1043_v54 = vmul.f32 0.5, %v908_v46  ;;  %v1045_v55 = vmul.f32 0.5, %v951_v47  ;;  %v912_v56 = vadd.f32 %v911_v52, %v553_v40  ;;  %v955_v57 = vadd.f32 %v954_v53, %v561_v41  ;;  %v913_v58 = vpop.f32.mrb[7].mxu0  ;;  %v956_v59 = vpop.f32.mrb[7].mxu1 }
 0x2d0   : > { %v1044_v60 = vmul.f32 0.5, %v910_v50  ;;  %v1046_v61 = vmul.f32 0.5, %v953_v51  ;;  %v914_v62 = vadd.f32 %v913_v58, %v557_v42  ;;  %v957_v63 = vadd.f32 %v956_v59, %v565_v43 }
 0x2d1   : > { %1495 = vtanh.f32 %v1043_v54  ;;  %v1050_v1 = vmul.f32 0.5, %v912_v56  ;;  %v1052_v2 = vmul.f32 0.5, %v955_v57 }
 0x2d2   : > { %1497 = vtanh.f32 %v1045_v55  ;;  %v1051_v3 = vmul.f32 0.5, %v914_v62  ;;  %v1053_v4 = vmul.f32 0.5, %v957_v63 }
 0x2d3   : > { %1499 = vtanh.f32 %v1044_v60 }
 0x2d4   : > { %1501 = vtanh.f32 %v1046_v61 }
 0x2d5   : > { %1503 = vtanh.f32 %v1050_v1 }
 0x2d6   : > { %1505 = vtanh.f32 %v1052_v2 }
 0x2d7   : > { %1507 = vtanh.f32 %v1051_v3 }
 0x2d8   : > { %1509 = vtanh.f32 %v1053_v4 }
 0x2db   : > { %v1496_v5 = vpop.eup %1495 }
 0x2dc   : > { %v1498_v6 = vpop.eup %1497  ;;  %v1071_v7 = vmul.f32 0.5, %v1496_v5 }
 0x2dd   : > { %v1500_v8 = vpop.eup %1499  ;;  %v1073_v9 = vmul.f32 0.5, %v1498_v6 }
 0x2de   : > { %v1502_v10 = vpop.eup %1501  ;;  %v1085_v11 = vadd.f32 0.5, %v1071_v7  ;;  %v1072_v12 = vmul.f32 0.5, %v1500_v8 }
 0x2df   : > { %v1504_v13 = vpop.eup %1503  ;;  %v1087_v14 = vadd.f32 0.5, %v1073_v9  ;;  %v1074_v15 = vmul.f32 0.5, %v1502_v10 }
 0x2e0   : > { %v1506_v16 = vpop.eup %1505  ;;  %1099 = vst [vmem:[%s1829_s16] sm:$0xff] %v1085_v11  ;;  %v1086_v17 = vadd.f32 0.5, %v1072_v12  ;;  %v1078_v18 = vmul.f32 0.5, %v1504_v13 }
 0x2e1   : > { %v1508_v19 = vpop.eup %1507  ;;  %1101 = vst [vmem:[%s1829_s16 + $0x10] sm:$0xff] %v1087_v14  ;;  %v1088_v20 = vadd.f32 0.5, %v1074_v15  ;;  %v1080_v21 = vmul.f32 0.5, %v1506_v16 }
 0x2e2   : > { %v1510_v22 = vpop.eup %1509  ;;  %1100 = vst [vmem:[%s1829_s16 + $0x8] sm:$0xff] %v1086_v17  ;;  %v1092_v23 = vadd.f32 0.5, %v1078_v18  ;;  %v1079_v24 = vmul.f32 0.5, %v1508_v19 }
 0x2e3   : > { %1102 = vst [vmem:[%s1829_s16 + $0x18] sm:$0xff] %v1088_v20  ;;  %v1094_v25 = vadd.f32 0.5, %v1080_v21  ;;  %v1081_v26 = vmul.f32 0.5, %v1510_v22 }
 0x2e4   : > { %1106 = vst [vmem:[%s1829_s16 + $0x38] sm:$0xff] %v1092_v23  ;;  %v1093_v27 = vadd.f32 0.5, %v1079_v24 }
 0x2e5   : > { %1108 = vst [vmem:[%s1829_s16 + $0x48] sm:$0xff] %v1094_v25  ;;  %v1095_v28 = vadd.f32 0.5, %v1081_v26 }
 0x2e6   : > { %1107 = vst [vmem:[%s1829_s16 + $0x40] sm:$0xff] %v1093_v27 }
 0x2e7   : > { %1109 = vst [vmem:[%s1829_s16 + $0x50] sm:$0xff] %v1095_v28 }
 0x2ec   : > { %v993_v36 = vpop.f32.mrb[8].mxu0  ;;  %v1036_v37 = vpop.f32.mrb[8].mxu1 }
 0x2ed   : > { %v994_v39 = vadd.f32 %v993_v36, %v569_v32  ;;  %v1037_v0 = vadd.f32 %v1036_v37, %v577_v33  ;;  %v995_v40 = vpop.f32.mrb[9].mxu0  ;;  %v1346_v41 = vpop.f32.mrb[9].mxu1 }
 0x2ee   : > { %v996_v42 = vadd.f32 %v995_v40, %v573_v34  ;;  %v997_v43 = vpop.f32.mrb[10].mxu0  ;;  %v1039_v44 = vpop.f32.mrb[10].mxu1 }
 0x2ef   : > { %v1047_v45 = vmul.f32 0.5, %v994_v39  ;;  %v1049_v46 = vmul.f32 0.5, %v1037_v0  ;;  %v998_v47 = vadd.f32 %v997_v43, %v569_v32  ;;  %v1040_v35 = vadd.f32 %v1039_v44, %v577_v33  ;;  %v999_v48 = vpop.f32.mrb[11].mxu0  ;;  %v1347_v49 = vpop.f32.mrb[11].mxu1 }
 0x2f0   : > { %v1048_v50 = vmul.f32 0.5, %v996_v42  ;;  %v1000_v51 = vadd.f32 %v999_v48, %v573_v34 }
 0x2f1   : > { %1511 = vtanh.f32 %v1047_v45  ;;  %v1054_v52 = vmul.f32 0.5, %v998_v47  ;;  %v1056_v38 = vmul.f32 0.5, %v1040_v35 }
 0x2f2   : > { %1513 = vtanh.f32 %v1049_v46  ;;  %v1055_v53 = vmul.f32 0.5, %v1000_v51 }
 0x2f3   : > { %1515 = vtanh.f32 %v1048_v50 }
 0x2f4   : > { %1517 = vtanh.f32 %v1054_v52 }
 0x2f5   : > { %1519 = vtanh.f32 %v1056_v38 }
 0x2f6   : > { %1521 = vtanh.f32 %v1055_v53 }
 0x2fb   : > { %v1512_v54 = vpop.eup %1511 }
 0x2fc   : > { %v1514_v55 = vpop.eup %1513  ;;  %v1075_v56 = vmul.f32 0.5, %v1512_v54 }
 0x2fd   : > { %v1516_v57 = vpop.eup %1515  ;;  %v1077_v58 = vmul.f32 0.5, %v1514_v55 }
 0x2fe   : > { %v1518_v59 = vpop.eup %1517  ;;  %v1089_v60 = vadd.f32 0.5, %v1075_v56  ;;  %v1076_v61 = vmul.f32 0.5, %v1516_v57 }
 0x2ff   : > { %v1520_v62 = vpop.eup %1519  ;;  %v1091_v63 = vadd.f32 0.5, %v1077_v58  ;;  %v1082_v1 = vmul.f32 0.5, %v1518_v59 }
 0x300   : > { %v1522_v2 = vpop.eup %1521  ;;  %1103 = vst [vmem:[%s1829_s16 + $0x20] sm:$0xff] %v1089_v60  ;;  %v1090_v3 = vadd.f32 0.5, %v1076_v61  ;;  %v1084_v4 = vmul.f32 0.5, %v1520_v62 }
 0x301   : > { %1105 = vst [vmem:[%s1829_s16 + $0x30] sm:$0xff] %v1091_v63  ;;  %v1096_v5 = vadd.f32 0.5, %v1082_v1  ;;  %v1083_v6 = vmul.f32 0.5, %v1522_v2 }
 0x302   : > { %1104 = vst [vmem:[%s1829_s16 + $0x28] sm:$0xff] %v1090_v3  ;;  %v1098_v7 = vadd.f32 0.5, %v1084_v4 }
 0x303   : > { %1110 = vst [vmem:[%s1829_s16 + $0x58] sm:$0xff] %v1096_v5  ;;  %v1097_v8 = vadd.f32 0.5, %v1083_v6 }
 0x304   : > { %1112 = vst [vmem:[%s1829_s16 + $0x68] sm:$0xff] %v1098_v7 }
 0x305   : > { %1111 = vst [vmem:[%s1829_s16 + $0x60] sm:$0xff] %v1097_v8 }
 0x306   : > { %1564 = shalt.err (!%p1561_p7)
}
 0x307   : > { %s1565_s17 = scalar_lea.hbm %s1853_s28, 1792  ;;  %s1569_s15 = scalar_lea.hbm %s1910_s7, 7168 }
 0x308   : > { %p1566_p8 = scmp.ne.s32.totalorder %s1853_s28, %s1565_s17  ;;  %p1570_p1 = scmp.lt.u32.totalorder %s1853_s28, %s1910_s7 }
 0x309   : > { %p1571_p0 = scmp.lt.u32.totalorder %s1569_s15, %s1565_s17  ;;  %p1573_p6 = scmp.lt.u32.totalorder %s1565_s17, %s1853_s28 }
 0x30a   : > { %p1567_p11 = pnand %p1566_p8, %p1921_p9 }
 0x30b   : > { %p1572_p5 = por %p1571_p0, %p1570_p1 }
 0x30c   : > { %p1568_p13 = pneg %p1567_p11 }
 0x30d   : > { %p1574_p10 = por %p1573_p6, %p1572_p5 }
 0x30f   : > { %p1575_p12 = pnand %p1574_p10, %p1568_p13 }
 0x311   : > { %1578 = shalt.err (!%p1575_p12)
}
 0x312   : > { %s1626_s21 = smov 896   ;;  %s1627_s22 = smov 56  }
 0x313   : > { %1354 = dma.vmem_to_hbm [thread:$0]  (%p1921_p9), %s1856_s20, 1792, %s1853_s28, %s1862_s23, %s1626_s21, %s1626_s21, %s1627_s22  }
 0x314 PF: > { %p1366_p2 = scmp.ge.s32.totalorder %s1617_s27, 2  ;;  %s1143_s29 = sand.u32 1, %s1605_s24  }
 0x315   : > { %p1922_p3 = scmp.ne.s32.totalorder %s1915_s12, 0  ;;  %s1144_s8 = scalar_lea.sflag [#allocation4], %s1143_s29 }
 0x317   : > { %p1361_p4 = pnand %p1366_p2, %p1922_p3 }
 0x319   : > { %1600 = dma.done.wait (!%p1361_p4), %s1144_s8, 1792  }
 0x31a   : > { %1602 = vsyncadd (!%p1361_p4), %s1144_s8, 4294965504  ;;  %p18_p7 = scmp.ge.s32.totalorder %s1693_s30, 6   ;;  %s1923_s24 = smov %s1609_s25 }
 0x31b   : > { %s1924_s25 = smov %s1613_s26  ;;  %s1925_s26 = smov %s1704_s10 }
 0x31c   : > { %s1926_s27 = smov %s1693_s30  ;;  %20 = sbr.rel (!%p18_p7) target bundleno = 4 (0x4), region = 88 }
 0x323   :  { %1149 = vsyncpa [#allocation3], 1 }
 0x324   :  { %1151 = vsyncpa [#allocation3 + $0x1], 1 }
 0x325   :  { %1152 = vsyncpa [#allocation4], 1 }
 0x326   :  { %1154 = vsyncpa [#allocation4 + $0x1], 1 }

</bundles_post_ra>
